<compile_context>
chip_gen: v5e
topology: v5e:2x2
jax: 0.10.0
libtpu: 0.0.40
codegen_flags: <defaults>
</compile_context>

<pallas_src>
import jax
import jax.numpy as jnp
from jax import lax
from jax.experimental import pallas as pl
from jax.experimental.pallas import tpu as pltpu


def _ceil_to(x, m):
    return ((x + m - 1) // m) * m


def make_inception_forward(in_channels, c1, c2, c3, c4):
    """Returns a jitted forward(x_nchw, params) for the Inception block."""
    Cin = in_channels
    c2m = _ceil_to(c2[0], 8)      # pad mid-channels to sublane multiples
    c3m = _ceil_to(c3[0], 8)
    C1m = c1 + c2m + c3m          # fused stage-1 output channels
    c2out, c3out = c2[1], c3[1]
    Ctot = c1 + c2out + c3out + c4
    P = 2                         # common spatial pad (max over branches)
    NEG = -1e30                   # stand-in for MaxPool2d's -inf padding

    def forward(x_nchw, params):
        N, C, H, W = x_nchw.shape
        assert C == Cin
        Hp, Wp = H + 2 * P, W + 2 * P
        Lp = Hp * Wp              # flattened padded spatial axis (lane dim)
        M3 = Wp + 1               # max |tap offset| for 3x3 conv / 3x3 pool
        M5 = 2 * Wp + 2           # max |tap offset| for 5x5 conv

        f32, bf16 = jnp.float32, jnp.bfloat16

        # ------------- pack & cast parameters (trivial one-off XLA) ----------
        def t1x1(w):              # (1,1,Cin,Co) HWIO -> (Co, Cin)
            return jnp.transpose(w.reshape(Cin, -1))

        w1f = jnp.concatenate([
            t1x1(params['p1_1_w']),
            jnp.pad(t1x1(params['p2_1_w']), ((0, c2m - c2[0]), (0, 0))),
            jnp.pad(t1x1(params['p3_1_w']), ((0, c3m - c3[0]), (0, 0))),
        ], axis=0).astype(bf16)                                   # (C1m, Cin)
        b1f = jnp.concatenate([
            params['p1_1_b'],
            jnp.pad(params['p2_1_b'], (0, c2m - c2[0])),
            jnp.pad(params['p3_1_b'], (0, c3m - c3[0])),
        ])[:, None].astype(f32)                                   # (C1m, 1)

        w3p = jnp.transpose(
            jnp.pad(params['p2_2_w'],
                    ((0, 0), (0, 0), (0, c2m - c2[0]), (0, 0))
                    ).reshape(9 * c2m, c2out)).astype(bf16)       # (c2out, 9*c2m)
        b3 = params['p2_2_b'][:, None].astype(f32)
        w5p = jnp.transpose(
            jnp.pad(params['p3_2_w'],
                    ((0, 0), (0, 0), (0, c3m - c3[0]), (0, 0))
                    ).reshape(25 * c3m, c3out)).astype(bf16)      # (c3out, 25*c3m)
        b5 = params['p3_2_b'][:, None].astype(f32)
        w4 = t1x1(params['p4_2_w']).astype(bf16)                  # (c4, Cin)
        b4 = params['p4_2_b'][:, None].astype(f32)

        # padded NCHW-flat input, cast to bf16 at the pallas_call boundary
        xp = jnp.pad(x_nchw, ((0, 0), (0, 0), (P, P), (P, P)))
        xp = xp.reshape(N, Cin, Lp).astype(bf16)
        # interior (non-pad) mask over the padded flat spatial axis
        mask = jnp.zeros((Hp, Wp), f32).at[P:P + H, P:P + W].set(1.0)
        mask = mask.reshape(1, Lp)

        def kernel(x_ref, mask_ref, w1_ref, b1_ref, w3_ref, b3_ref,
                   w5_ref, b5_ref, w4_ref, b4_ref, o_ref,
                   t2s, t3s, ps):
            interior = mask_ref[...] != 0.0                        # (1, Lp) bool
            x_bf = x_ref[...]                                      # (Cin, Lp) bf16

            # -------- stage 1: fused 1x1 convs (p1_1 | p2_1 | p3_1) --------
            t = jnp.dot(w1_ref[...], x_bf, preferred_element_type=jnp.float32)
            t = jnp.maximum(t + b1_ref[...], 0.0)
            # zero the pad columns -> this doubles as the zero-padding that
            # the downstream 3x3/5x5 convs need
            t = jnp.where(interior, t, 0.0)                        # (C1m, Lp) f32

            # branch 1: straight to output (NCHW rows [0, c1))
            o_ref[0:c1, :] = t[0:c1, :].astype(o_ref.dtype)

            # -------- branch 2: 3x3 conv via tap-packed im2col --------
            t2 = t[c1:c1 + c2m, :]
            t2s[:, 0:2 * M3] = jnp.zeros((9 * c2m, 2 * M3), jnp.float32)
            t2s[:, Lp:Lp + 2 * M3] = jnp.zeros((9 * c2m, 2 * M3), jnp.float32)
            for kh in range(3):
                for kw in range(3):
                    j = kh * 3 + kw
                    off = (kh - 1) * Wp + (kw - 1)      # tap offset in flat space
                    s = M3 - off
                    t2s[j * c2m:(j + 1) * c2m, s:s + Lp] = t2
            T2 = t2s[:, M3:M3 + Lp].astype(jnp.bfloat16)           # (9*c2m, Lp)
            q2 = jnp.dot(w3_ref[...], T2, preferred_element_type=jnp.float32)
            q2 = jnp.maximum(q2 + b3_ref[...], 0.0)
            o_ref[c1:c1 + c2out, :] = q2.astype(o_ref.dtype)

            # -------- branch 3: 5x5 conv via tap-packed im2col --------
            t3 = t[c1 + c2m:c1 + c2m + c3m, :]
            t3s[:, 0:2 * M5] = jnp.zeros((25 * c3m, 2 * M5), jnp.float32)
            t3s[:, Lp:Lp + 2 * M5] = jnp.zeros((25 * c3m, 2 * M5), jnp.float32)
            for kh in range(5):
                for kw in range(5):
                    j = kh * 5 + kw
                    off = (kh - 2) * Wp + (kw - 2)
                    s = M5 - off
                    t3s[j * c3m:(j + 1) * c3m, s:s + Lp] = t3
            T3 = t3s[:, M5:M5 + Lp].astype(jnp.bfloat16)           # (25*c3m, Lp)
            q3 = jnp.dot(w5_ref[...], T3, preferred_element_type=jnp.float32)
            q3 = jnp.maximum(q3 + b5_ref[...], 0.0)
            o_ref[c1 + c2out:c1 + c2out + c3out, :] = q3.astype(o_ref.dtype)

            # -------- branch 4: 3x3 max-pool (-inf pad) + 1x1 conv --------
            xf = x_bf.astype(jnp.float32)
            ps[:, 0:M3] = jnp.zeros((Cin, M3), jnp.float32)
            ps[:, M3 + Lp:M3 + Lp + M3] = jnp.zeros((Cin, M3), jnp.float32)
            ps[:, M3:M3 + Lp] = jnp.where(interior, xf, NEG)
            m = jnp.full((Cin, Lp), NEG, jnp.float32)
            for kh in range(3):
                for kw in range(3):
                    off = (kh - 1) * Wp + (kw - 1)
                    m = jnp.maximum(m, ps[:, M3 + off:M3 + off + Lp])
            # keep the -1e30 sentinel out of the MXU: zero pad columns first
            m = jnp.where(interior, m, 0.0).astype(jnp.bfloat16)
            q4 = jnp.dot(w4_ref[...], m, preferred_element_type=jnp.float32)
            q4 = jnp.maximum(q4 + b4_ref[...], 0.0)
            o_ref[c1 + c2out + c3out:, :] = q4.astype(o_ref.dtype)

        out = pl.pallas_call(
            kernel,
            out_shape=jax.ShapeDtypeStruct((N, Ctot, Lp), jnp.float32),
            grid_spec=pltpu.PrefetchScalarGridSpec(
                num_scalar_prefetch=0,
                grid=(N,),
                in_specs=[
                    pl.BlockSpec((None, Cin, Lp), lambda n: (n, 0, 0)),   # x
                    pl.BlockSpec((1, Lp), lambda n: (0, 0)),              # mask
                    pl.BlockSpec((C1m, Cin), lambda n: (0, 0)),           # w 1x1 fused
                    pl.BlockSpec((C1m, 1), lambda n: (0, 0)),             # b 1x1 fused
                    pl.BlockSpec((c2out, 9 * c2m), lambda n: (0, 0)),     # w 3x3 packed
                    pl.BlockSpec((c2out, 1), lambda n: (0, 0)),           # b 3x3
                    pl.BlockSpec((c3out, 25 * c3m), lambda n: (0, 0)),    # w 5x5 packed
                    pl.BlockSpec((c3out, 1), lambda n: (0, 0)),           # b 5x5
                    pl.BlockSpec((c4, Cin), lambda n: (0, 0)),            # w pool-1x1
                    pl.BlockSpec((c4, 1), lambda n: (0, 0)),              # b pool-1x1
                ],
                out_specs=pl.BlockSpec((None, Ctot, Lp), lambda n: (n, 0, 0)),
                scratch_shapes=[
                    pltpu.VMEM((9 * c2m, Lp + 2 * M3), jnp.float32),   # im2col 3x3
                    pltpu.VMEM((25 * c3m, Lp + 2 * M5), jnp.float32),  # im2col 5x5
                    pltpu.VMEM((Cin, Lp + 2 * M3), jnp.float32),       # padded pool input
                ],
            ),
            compiler_params=pltpu.CompilerParams(
                dimension_semantics=("parallel",)),
        )(xp, mask, w1f, b1f, w3p, b3, w5p, b5, w4, b4)

        # drop spatial padding; result is already NCHW (no transpose needed)
        out = out.reshape(N, Ctot, Hp, Wp)[:, :, P:P + H, P:P + W]
        return out

    return jax.jit(forward)


def init_inception_params(key, in_channels, c1, c2, c3, c4):
    ks = jax.random.split(key, 12)
    w = lambda k, kh, kw, ci, co: 0.1 * jax.random.normal(k, (kh, kw, ci, co), jnp.float32)
    b = lambda k, co: 0.1 * jax.random.normal(k, (co,), jnp.float32)
    return {
        'p1_1_w': w(ks[0], 1, 1, in_channels, c1),    'p1_1_b': b(ks[1], c1),
        'p2_1_w': w(ks[2], 1, 1, in_channels, c2[0]), 'p2_1_b': b(ks[3], c2[0]),
        'p2_2_w': w(ks[4], 3, 3, c2[0], c2[1]),       'p2_2_b': b(ks[5], c2[1]),
        'p3_1_w': w(ks[6], 1, 1, in_channels, c3[0]), 'p3_1_b': b(ks[7], c3[0]),
        'p3_2_w': w(ks[8], 5, 5, c3[0], c3[1]),       'p3_2_b': b(ks[9], c3[1]),
        'p4_2_w': w(ks[10], 1, 1, in_channels, c4),   'p4_2_b': b(ks[11], c4),
    }


def inception_reference(x_nchw, params):
    """Pure-JAX reference (matches PyTorch semantics) for the correctness check."""
    x = jnp.transpose(x_nchw, (0, 2, 3, 1)).astype(jnp.float32)

    def conv(h, w, bias, pad):
        y = lax.conv_general_dilated(h, w, (1, 1), ((pad, pad), (pad, pad)),
                                     dimension_numbers=('NHWC', 'HWIO', 'NHWC'))
        return jax.nn.relu(y + bias)

    p1 = conv(x, params['p1_1_w'], params['p1_1_b'], 0)
    p2 = conv(conv(x, params['p2_1_w'], params['p2_1_b'], 0),
              params['p2_2_w'], params['p2_2_b'], 1)
    p3 = conv(conv(x, params['p3_1_w'], params['p3_1_b'], 0),
              params['p3_2_w'], params['p3_2_b'], 2)
    mp = lax.reduce_window(x, -jnp.inf, lax.max, (1, 3, 3, 1), (1, 1, 1, 1),
                           ((0, 0), (1, 1), (1, 1), (0, 0)))
    p4 = conv(mp, params['p4_2_w'], params['p4_2_b'], 0)
    out = jnp.concatenate([p1, p2, p3, p4], axis=-1)
    return jnp.transpose(out, (0, 3, 1, 2))


if __name__ == "__main__":
    key = jax.random.PRNGKey(0)
    kx, kp = jax.random.split(key)

    N, Cin, H, W = 2, 8, 16, 16
    c1, c2, c3, c4 = 8, (8, 16), (4, 8), 8

    x = jax.random.normal(kx, (N, Cin, H, W), jnp.float32)
    params = init_inception_params(kp, Cin, c1, c2, c3, c4)

    fwd = make_inception_forward(Cin, c1, c2, c3, c4)
    out = jax.block_until_ready(fwd(x, params))
    assert out.shape == (N, c1 + c2[1] + c3[1] + c4, H, W), out.shape

    # Precision-matched reference: the kernel consumes bf16-rounded x / conv
    # weights (biases stay f32), so feed the f32 reference the same values.
    rb = lambda t: t.astype(jnp.bfloat16).astype(jnp.float32)
    params_r = {k: (rb(v) if k.endswith('_w') else v) for k, v in params.items()}
    ref = jax.block_until_ready(inception_reference(rb(x), params_r))

    max_err = float(jnp.max(jnp.abs(out - ref)))
    assert jnp.allclose(out, ref, rtol=1e-2, atol=1e-2), max_err

    print("KERNEL_OK")
</pallas_src>

<mosaic_0001>
module attributes {stable_mosaic.version = 11 : i64} {
  func.func @kernel(%arg0: i32, %arg1: memref<1x8x400xbf16, #tpu.memory_space<vmem>>, %arg2: memref<1x400xf32, #tpu.memory_space<vmem>>, %arg3: memref<24x8xbf16, #tpu.memory_space<vmem>>, %arg4: memref<24x1xf32, #tpu.memory_space<vmem>>, %arg5: memref<16x72xbf16, #tpu.memory_space<vmem>>, %arg6: memref<16x1xf32, #tpu.memory_space<vmem>>, %arg7: memref<8x200xbf16, #tpu.memory_space<vmem>>, %arg8: memref<8x1xf32, #tpu.memory_space<vmem>>, %arg9: memref<8x8xbf16, #tpu.memory_space<vmem>>, %arg10: memref<8x1xf32, #tpu.memory_space<vmem>>, %arg11: memref<1x40x400xf32, #tpu.memory_space<vmem>>, %arg12: memref<72x442xf32, #tpu.memory_space<vmem>>, %arg13: memref<200x484xf32, #tpu.memory_space<vmem>>, %arg14: memref<8x442xf32, #tpu.memory_space<vmem>>) attributes {dimension_semantics = [#tpu.dimension_semantics<parallel>], iteration_bounds = array<i64: 2>, scalar_prefetch = 0 : i64, scratch_operands = 3 : i64, tpu.core_type = #tpu.core_type<tc>, window_params = [{transform_indices = @transform_0, window_bounds = array<i64: 1, 8, 400>}, {pipeline_mode = #tpu.pipeline_mode<synchronous>, transform_indices = @transform_1, window_bounds = array<i64: 1, 400>}, {pipeline_mode = #tpu.pipeline_mode<synchronous>, transform_indices = @transform_2, window_bounds = array<i64: 24, 8>}, {pipeline_mode = #tpu.pipeline_mode<synchronous>, transform_indices = @transform_3, window_bounds = array<i64: 24, 1>}, {pipeline_mode = #tpu.pipeline_mode<synchronous>, transform_indices = @transform_4, window_bounds = array<i64: 16, 72>}, {pipeline_mode = #tpu.pipeline_mode<synchronous>, transform_indices = @transform_5, window_bounds = array<i64: 16, 1>}, {pipeline_mode = #tpu.pipeline_mode<synchronous>, transform_indices = @transform_6, window_bounds = array<i64: 8, 200>}, {pipeline_mode = #tpu.pipeline_mode<synchronous>, transform_indices = @transform_7, window_bounds = array<i64: 8, 1>}, {pipeline_mode = #tpu.pipeline_mode<synchronous>, transform_indices = @transform_8, window_bounds = array<i64: 8, 8>}, {pipeline_mode = #tpu.pipeline_mode<synchronous>, transform_indices = @transform_9, window_bounds = array<i64: 8, 1>}, {transform_indices = @transform_10, window_bounds = array<i64: 1, 40, 400>}]} {
    %c0 = arith.constant 0 : index
    %c0_0 = arith.constant 0 : index
    %0 = vector.load %arg2[%c0, %c0_0] : memref<1x400xf32, #tpu.memory_space<vmem>>, vector<1x400xf32>
    %cst = arith.constant 0.000000e+00 : f32
    %1 = vector.broadcast %cst : f32 to vector<1x400xf32>
    %2 = arith.cmpf one, %0, %1 : vector<1x400xf32>
    %c0_1 = arith.constant 0 : index
    %c0_2 = arith.constant 0 : index
    %c0_3 = arith.constant 0 : index
    %3 = vector.load %arg1[%c0_1, %c0_2, %c0_3] : memref<1x8x400xbf16, #tpu.memory_space<vmem>>, vector<1x8x400xbf16>
    %4 = vector.shape_cast %3 : vector<1x8x400xbf16> to vector<8x400xbf16>
    %c0_4 = arith.constant 0 : index
    %c0_5 = arith.constant 0 : index
    %5 = vector.load %arg3[%c0_4, %c0_5] : memref<24x8xbf16, #tpu.memory_space<vmem>>, vector<24x8xbf16>
    %cst_6 = arith.constant dense<0.000000e+00> : vector<24x400xf32>
    %6 = tpu.matmul %5, %4, %cst_6 {dimension_numbers = #tpu.dot_dimension_numbers<[1], [0], [0], [1], [0, 0, 1, 1], [], []>} : vector<24x8xbf16>, vector<8x400xbf16>, vector<24x400xf32> -> vector<24x400xf32>
    %c0_7 = arith.constant 0 : index
    %c0_8 = arith.constant 0 : index
    %7 = vector.load %arg4[%c0_7, %c0_8] : memref<24x1xf32, #tpu.memory_space<vmem>>, vector<24x1xf32>
    %8 = vector.broadcast %7 : vector<24x1xf32> to vector<24x400xf32>
    %9 = arith.addf %6, %8 : vector<24x400xf32>
    %cst_9 = arith.constant 0.000000e+00 : f32
    %10 = vector.broadcast %cst_9 : f32 to vector<24x400xf32>
    %11 = arith.maximumf %9, %10 : vector<24x400xf32>
    %cst_10 = arith.constant 0.000000e+00 : f32
    %12 = vector.shape_cast %2 : vector<1x400xi1> to vector<1x400xi1>
    %13 = vector.broadcast %12 : vector<1x400xi1> to vector<24x400xi1>
    %14 = vector.broadcast %cst_10 : f32 to vector<24x400xf32>
    %15 = arith.select %13, %11, %14 : vector<24x400xi1>, vector<24x400xf32>
    %16 = vector.extract_strided_slice %15 {offsets = [0, 0], sizes = [8, 400], strides = [1, 1]} : vector<24x400xf32> to vector<8x400xf32>
    %c0_11 = arith.constant 0 : index
    %c0_12 = arith.constant 0 : index
    %c0_13 = arith.constant 0 : index
    %17 = vector.load %arg11[%c0_11, %c0_12, %c0_13] : memref<1x40x400xf32, #tpu.memory_space<vmem>>, vector<1x8x400xf32>
    %18 = vector.shape_cast %17 : vector<1x8x400xf32> to vector<8x400xf32>
    %19 = vector.shape_cast %16 : vector<8x400xf32> to vector<1x8x400xf32>
    tpu.vector_store %arg11[%c0_11, %c0_12, %c0_13], %19 {strides = array<i32>} : memref<1x40x400xf32, #tpu.memory_space<vmem>>, vector<1x8x400xf32>,
    %20 = vector.extract_strided_slice %15 {offsets = [8, 0], sizes = [8, 400], strides = [1, 1]} : vector<24x400xf32> to vector<8x400xf32>
    %cst_14 = arith.constant 0.000000e+00 : f32
    %21 = vector.broadcast %cst_14 : f32 to vector<72x42xf32>
    %c0_15 = arith.constant 0 : index
    %c0_16 = arith.constant 0 : index
    %22 = vector.load %arg12[%c0_15, %c0_16] : memref<72x442xf32, #tpu.memory_space<vmem>>, vector<72x42xf32>
    tpu.vector_store %arg12[%c0_15, %c0_16], %21 {strides = array<i32>} : memref<72x442xf32, #tpu.memory_space<vmem>>, vector<72x42xf32>,
    %cst_17 = arith.constant 0.000000e+00 : f32
    %23 = vector.broadcast %cst_17 : f32 to vector<72x42xf32>
    %c0_18 = arith.constant 0 : index
    %c400 = arith.constant 400 : index
    %24 = vector.load %arg12[%c0_18, %c400] : memref<72x442xf32, #tpu.memory_space<vmem>>, vector<72x42xf32>
    tpu.vector_store %arg12[%c0_18, %c400], %23 {strides = array<i32>} : memref<72x442xf32, #tpu.memory_space<vmem>>, vector<72x42xf32>,
    %c0_19 = arith.constant 0 : index
    %c42 = arith.constant 42 : index
    %25 = vector.load %arg12[%c0_19, %c42] : memref<72x442xf32, #tpu.memory_space<vmem>>, vector<8x400xf32>
    tpu.vector_store %arg12[%c0_19, %c42], %20 {strides = array<i32>} : memref<72x442xf32, #tpu.memory_space<vmem>>, vector<8x400xf32>,
    %c8 = arith.constant 8 : index
    %c41 = arith.constant 41 : index
    %26 = vector.load %arg12[%c8, %c41] : memref<72x442xf32, #tpu.memory_space<vmem>>, vector<8x400xf32>
    tpu.vector_store %arg12[%c8, %c41], %20 {strides = array<i32>} : memref<72x442xf32, #tpu.memory_space<vmem>>, vector<8x400xf32>,
    %c16 = arith.constant 16 : index
    %c40 = arith.constant 40 : index
    %27 = vector.load %arg12[%c16, %c40] : memref<72x442xf32, #tpu.memory_space<vmem>>, vector<8x400xf32>
    tpu.vector_store %arg12[%c16, %c40], %20 {strides = array<i32>} : memref<72x442xf32, #tpu.memory_space<vmem>>, vector<8x400xf32>,
    %c24 = arith.constant 24 : index
    %c22 = arith.constant 22 : index
    %28 = vector.load %arg12[%c24, %c22] : memref<72x442xf32, #tpu.memory_space<vmem>>, vector<8x400xf32>
    tpu.vector_store %arg12[%c24, %c22], %20 {strides = array<i32>} : memref<72x442xf32, #tpu.memory_space<vmem>>, vector<8x400xf32>,
    %c32 = arith.constant 32 : index
    %c21 = arith.constant 21 : index
    %29 = vector.load %arg12[%c32, %c21] : memref<72x442xf32, #tpu.memory_space<vmem>>, vector<8x400xf32>
    tpu.vector_store %arg12[%c32, %c21], %20 {strides = array<i32>} : memref<72x442xf32, #tpu.memory_space<vmem>>, vector<8x400xf32>,
    %c40_20 = arith.constant 40 : index
    %c20 = arith.constant 20 : index
    %30 = vector.load %arg12[%c40_20, %c20] : memref<72x442xf32, #tpu.memory_space<vmem>>, vector<8x400xf32>
    tpu.vector_store %arg12[%c40_20, %c20], %20 {strides = array<i32>} : memref<72x442xf32, #tpu.memory_space<vmem>>, vector<8x400xf32>,
    %c48 = arith.constant 48 : index
    %c2 = arith.constant 2 : index
    %31 = vector.load %arg12[%c48, %c2] : memref<72x442xf32, #tpu.memory_space<vmem>>, vector<8x400xf32>
    tpu.vector_store %arg12[%c48, %c2], %20 {strides = array<i32>} : memref<72x442xf32, #tpu.memory_space<vmem>>, vector<8x400xf32>,
    %c56 = arith.constant 56 : index
    %c1 = arith.constant 1 : index
    %32 = vector.load %arg12[%c56, %c1] : memref<72x442xf32, #tpu.memory_space<vmem>>, vector<8x400xf32>
    tpu.vector_store %arg12[%c56, %c1], %20 {strides = array<i32>} : memref<72x442xf32, #tpu.memory_space<vmem>>, vector<8x400xf32>,
    %c64 = arith.constant 64 : index
    %c0_21 = arith.constant 0 : index
    %33 = vector.load %arg12[%c64, %c0_21] : memref<72x442xf32, #tpu.memory_space<vmem>>, vector<8x400xf32>
    tpu.vector_store %arg12[%c64, %c0_21], %20 {strides = array<i32>} : memref<72x442xf32, #tpu.memory_space<vmem>>, vector<8x400xf32>,
    %c0_22 = arith.constant 0 : index
    %c21_23 = arith.constant 21 : index
    %34 = vector.load %arg12[%c0_22, %c21_23] : memref<72x442xf32, #tpu.memory_space<vmem>>, vector<72x400xf32>
    %35 = arith.truncf %34 : vector<72x400xf32> to vector<72x400xbf16>
    %c0_24 = arith.constant 0 : index
    %c0_25 = arith.constant 0 : index
    %36 = vector.load %arg5[%c0_24, %c0_25] : memref<16x72xbf16, #tpu.memory_space<vmem>>, vector<16x72xbf16>
    %cst_26 = arith.constant dense<0.000000e+00> : vector<16x400xf32>
    %37 = tpu.matmul %36, %35, %cst_26 {dimension_numbers = #tpu.dot_dimension_numbers<[1], [0], [0], [1], [0, 0, 1, 1], [], []>} : vector<16x72xbf16>, vector<72x400xbf16>, vector<16x400xf32> -> vector<16x400xf32>
    %c0_27 = arith.constant 0 : index
    %c0_28 = arith.constant 0 : index
    %38 = vector.load %arg6[%c0_27, %c0_28] : memref<16x1xf32, #tpu.memory_space<vmem>>, vector<16x1xf32>
    %39 = vector.broadcast %38 : vector<16x1xf32> to vector<16x400xf32>
    %40 = arith.addf %37, %39 : vector<16x400xf32>
    %cst_29 = arith.constant 0.000000e+00 : f32
    %41 = vector.broadcast %cst_29 : f32 to vector<16x400xf32>
    %42 = arith.maximumf %40, %41 : vector<16x400xf32>
    %c0_30 = arith.constant 0 : index
    %c8_31 = arith.constant 8 : index
    %c0_32 = arith.constant 0 : index
    %43 = vector.load %arg11[%c0_30, %c8_31, %c0_32] : memref<1x40x400xf32, #tpu.memory_space<vmem>>, vector<1x16x400xf32>
    %44 = vector.shape_cast %43 : vector<1x16x400xf32> to vector<16x400xf32>
    %45 = vector.shape_cast %42 : vector<16x400xf32> to vector<1x16x400xf32>
    tpu.vector_store %arg11[%c0_30, %c8_31, %c0_32], %45 {strides = array<i32>} : memref<1x40x400xf32, #tpu.memory_space<vmem>>, vector<1x16x400xf32>,
    %46 = vector.extract_strided_slice %15 {offsets = [16, 0], sizes = [8, 400], strides = [1, 1]} : vector<24x400xf32> to vector<8x400xf32>
    %cst_33 = arith.constant 0.000000e+00 : f32
    %47 = vector.broadcast %cst_33 : f32 to vector<200x84xf32>
    %c0_34 = arith.constant 0 : index
    %c0_35 = arith.constant 0 : index
    %48 = vector.load %arg13[%c0_34, %c0_35] : memref<200x484xf32, #tpu.memory_space<vmem>>, vector<200x84xf32>
    tpu.vector_store %arg13[%c0_34, %c0_35], %47 {strides = array<i32>} : memref<200x484xf32, #tpu.memory_space<vmem>>, vector<200x84xf32>,
    %cst_36 = arith.constant 0.000000e+00 : f32
    %49 = vector.broadcast %cst_36 : f32 to vector<200x84xf32>
    %c0_37 = arith.constant 0 : index
    %c400_38 = arith.constant 400 : index
    %50 = vector.load %arg13[%c0_37, %c400_38] : memref<200x484xf32, #tpu.memory_space<vmem>>, vector<200x84xf32>
    tpu.vector_store %arg13[%c0_37, %c400_38], %49 {strides = array<i32>} : memref<200x484xf32, #tpu.memory_space<vmem>>, vector<200x84xf32>,
    %c0_39 = arith.constant 0 : index
    %c84 = arith.constant 84 : index
    %51 = vector.load %arg13[%c0_39, %c84] : memref<200x484xf32, #tpu.memory_space<vmem>>, vector<8x400xf32>
    tpu.vector_store %arg13[%c0_39, %c84], %46 {strides = array<i32>} : memref<200x484xf32, #tpu.memory_space<vmem>>, vector<8x400xf32>,
    %c8_40 = arith.constant 8 : index
    %c83 = arith.constant 83 : index
    %52 = vector.load %arg13[%c8_40, %c83] : memref<200x484xf32, #tpu.memory_space<vmem>>, vector<8x400xf32>
    tpu.vector_store %arg13[%c8_40, %c83], %46 {strides = array<i32>} : memref<200x484xf32, #tpu.memory_space<vmem>>, vector<8x400xf32>,
    %c16_41 = arith.constant 16 : index
    %c82 = arith.constant 82 : index
    %53 = vector.load %arg13[%c16_41, %c82] : memref<200x484xf32, #tpu.memory_space<vmem>>, vector<8x400xf32>
    tpu.vector_store %arg13[%c16_41, %c82], %46 {strides = array<i32>} : memref<200x484xf32, #tpu.memory_space<vmem>>, vector<8x400xf32>,
    %c24_42 = arith.constant 24 : index
    %c81 = arith.constant 81 : index
    %54 = vector.load %arg13[%c24_42, %c81] : memref<200x484xf32, #tpu.memory_space<vmem>>, vector<8x400xf32>
    tpu.vector_store %arg13[%c24_42, %c81], %46 {strides = array<i32>} : memref<200x484xf32, #tpu.memory_space<vmem>>, vector<8x400xf32>,
    %c32_43 = arith.constant 32 : index
    %c80 = arith.constant 80 : index
    %55 = vector.load %arg13[%c32_43, %c80] : memref<200x484xf32, #tpu.memory_space<vmem>>, vector<8x400xf32>
    tpu.vector_store %arg13[%c32_43, %c80], %46 {strides = array<i32>} : memref<200x484xf32, #tpu.memory_space<vmem>>, vector<8x400xf32>,
    %c40_44 = arith.constant 40 : index
    %c64_45 = arith.constant 64 : index
    %56 = vector.load %arg13[%c40_44, %c64_45] : memref<200x484xf32, #tpu.memory_space<vmem>>, vector<8x400xf32>
    tpu.vector_store %arg13[%c40_44, %c64_45], %46 {strides = array<i32>} : memref<200x484xf32, #tpu.memory_space<vmem>>, vector<8x400xf32>,
    %c48_46 = arith.constant 48 : index
    %c63 = arith.constant 63 : index
    %57 = vector.load %arg13[%c48_46, %c63] : memref<200x484xf32, #tpu.memory_space<vmem>>, vector<8x400xf32>
    tpu.vector_store %arg13[%c48_46, %c63], %46 {strides = array<i32>} : memref<200x484xf32, #tpu.memory_space<vmem>>, vector<8x400xf32>,
    %c56_47 = arith.constant 56 : index
    %c62 = arith.constant 62 : index
    %58 = vector.load %arg13[%c56_47, %c62] : memref<200x484xf32, #tpu.memory_space<vmem>>, vector<8x400xf32>
    tpu.vector_store %arg13[%c56_47, %c62], %46 {strides = array<i32>} : memref<200x484xf32, #tpu.memory_space<vmem>>, vector<8x400xf32>,
    %c64_48 = arith.constant 64 : index
    %c61 = arith.constant 61 : index
    %59 = vector.load %arg13[%c64_48, %c61] : memref<200x484xf32, #tpu.memory_space<vmem>>, vector<8x400xf32>
    tpu.vector_store %arg13[%c64_48, %c61], %46 {strides = array<i32>} : memref<200x484xf32, #tpu.memory_space<vmem>>, vector<8x400xf32>,
    %c72 = arith.constant 72 : index
    %c60 = arith.constant 60 : index
    %60 = vector.load %arg13[%c72, %c60] : memref<200x484xf32, #tpu.memory_space<vmem>>, vector<8x400xf32>
    tpu.vector_store %arg13[%c72, %c60], %46 {strides = array<i32>} : memref<200x484xf32, #tpu.memory_space<vmem>>, vector<8x400xf32>,
    %c80_49 = arith.constant 80 : index
    %c44 = arith.constant 44 : index
    %61 = vector.load %arg13[%c80_49, %c44] : memref<200x484xf32, #tpu.memory_space<vmem>>, vector<8x400xf32>
    tpu.vector_store %arg13[%c80_49, %c44], %46 {strides = array<i32>} : memref<200x484xf32, #tpu.memory_space<vmem>>, vector<8x400xf32>,
    %c88 = arith.constant 88 : index
    %c43 = arith.constant 43 : index
    %62 = vector.load %arg13[%c88, %c43] : memref<200x484xf32, #tpu.memory_space<vmem>>, vector<8x400xf32>
    tpu.vector_store %arg13[%c88, %c43], %46 {strides = array<i32>} : memref<200x484xf32, #tpu.memory_space<vmem>>, vector<8x400xf32>,
    %c96 = arith.constant 96 : index
    %c42_50 = arith.constant 42 : index
    %63 = vector.load %arg13[%c96, %c42_50] : memref<200x484xf32, #tpu.memory_space<vmem>>, vector<8x400xf32>
    tpu.vector_store %arg13[%c96, %c42_50], %46 {strides = array<i32>} : memref<200x484xf32, #tpu.memory_space<vmem>>, vector<8x400xf32>,
    %c104 = arith.constant 104 : index
    %c41_51 = arith.constant 41 : index
    %64 = vector.load %arg13[%c104, %c41_51] : memref<200x484xf32, #tpu.memory_space<vmem>>, vector<8x400xf32>
    tpu.vector_store %arg13[%c104, %c41_51], %46 {strides = array<i32>} : memref<200x484xf32, #tpu.memory_space<vmem>>, vector<8x400xf32>,
    %c112 = arith.constant 112 : index
    %c40_52 = arith.constant 40 : index
    %65 = vector.load %arg13[%c112, %c40_52] : memref<200x484xf32, #tpu.memory_space<vmem>>, vector<8x400xf32>
    tpu.vector_store %arg13[%c112, %c40_52], %46 {strides = array<i32>} : memref<200x484xf32, #tpu.memory_space<vmem>>, vector<8x400xf32>,
    %c120 = arith.constant 120 : index
    %c24_53 = arith.constant 24 : index
    %66 = vector.load %arg13[%c120, %c24_53] : memref<200x484xf32, #tpu.memory_space<vmem>>, vector<8x400xf32>
    tpu.vector_store %arg13[%c120, %c24_53], %46 {strides = array<i32>} : memref<200x484xf32, #tpu.memory_space<vmem>>, vector<8x400xf32>,
    %c128 = arith.constant 128 : index
    %c23 = arith.constant 23 : index
    %67 = vector.load %arg13[%c128, %c23] : memref<200x484xf32, #tpu.memory_space<vmem>>, vector<8x400xf32>
    tpu.vector_store %arg13[%c128, %c23], %46 {strides = array<i32>} : memref<200x484xf32, #tpu.memory_space<vmem>>, vector<8x400xf32>,
    %c136 = arith.constant 136 : index
    %c22_54 = arith.constant 22 : index
    %68 = vector.load %arg13[%c136, %c22_54] : memref<200x484xf32, #tpu.memory_space<vmem>>, vector<8x400xf32>
    tpu.vector_store %arg13[%c136, %c22_54], %46 {strides = array<i32>} : memref<200x484xf32, #tpu.memory_space<vmem>>, vector<8x400xf32>,
    %c144 = arith.constant 144 : index
    %c21_55 = arith.constant 21 : index
    %69 = vector.load %arg13[%c144, %c21_55] : memref<200x484xf32, #tpu.memory_space<vmem>>, vector<8x400xf32>
    tpu.vector_store %arg13[%c144, %c21_55], %46 {strides = array<i32>} : memref<200x484xf32, #tpu.memory_space<vmem>>, vector<8x400xf32>,
    %c152 = arith.constant 152 : index
    %c20_56 = arith.constant 20 : index
    %70 = vector.load %arg13[%c152, %c20_56] : memref<200x484xf32, #tpu.memory_space<vmem>>, vector<8x400xf32>
    tpu.vector_store %arg13[%c152, %c20_56], %46 {strides = array<i32>} : memref<200x484xf32, #tpu.memory_space<vmem>>, vector<8x400xf32>,
    %c160 = arith.constant 160 : index
    %c4 = arith.constant 4 : index
    %71 = vector.load %arg13[%c160, %c4] : memref<200x484xf32, #tpu.memory_space<vmem>>, vector<8x400xf32>
    tpu.vector_store %arg13[%c160, %c4], %46 {strides = array<i32>} : memref<200x484xf32, #tpu.memory_space<vmem>>, vector<8x400xf32>,
    %c168 = arith.constant 168 : index
    %c3 = arith.constant 3 : index
    %72 = vector.load %arg13[%c168, %c3] : memref<200x484xf32, #tpu.memory_space<vmem>>, vector<8x400xf32>
    tpu.vector_store %arg13[%c168, %c3], %46 {strides = array<i32>} : memref<200x484xf32, #tpu.memory_space<vmem>>, vector<8x400xf32>,
    %c176 = arith.constant 176 : index
    %c2_57 = arith.constant 2 : index
    %73 = vector.load %arg13[%c176, %c2_57] : memref<200x484xf32, #tpu.memory_space<vmem>>, vector<8x400xf32>
    tpu.vector_store %arg13[%c176, %c2_57], %46 {strides = array<i32>} : memref<200x484xf32, #tpu.memory_space<vmem>>, vector<8x400xf32>,
    %c184 = arith.constant 184 : index
    %c1_58 = arith.constant 1 : index
    %74 = vector.load %arg13[%c184, %c1_58] : memref<200x484xf32, #tpu.memory_space<vmem>>, vector<8x400xf32>
    tpu.vector_store %arg13[%c184, %c1_58], %46 {strides = array<i32>} : memref<200x484xf32, #tpu.memory_space<vmem>>, vector<8x400xf32>,
    %c192 = arith.constant 192 : index
    %c0_59 = arith.constant 0 : index
    %75 = vector.load %arg13[%c192, %c0_59] : memref<200x484xf32, #tpu.memory_space<vmem>>, vector<8x400xf32>
    tpu.vector_store %arg13[%c192, %c0_59], %46 {strides = array<i32>} : memref<200x484xf32, #tpu.memory_space<vmem>>, vector<8x400xf32>,
    %c0_60 = arith.constant 0 : index
    %c42_61 = arith.constant 42 : index
    %76 = vector.load %arg13[%c0_60, %c42_61] : memref<200x484xf32, #tpu.memory_space<vmem>>, vector<200x400xf32>
    %77 = arith.truncf %76 : vector<200x400xf32> to vector<200x400xbf16>
    %c0_62 = arith.constant 0 : index
    %c0_63 = arith.constant 0 : index
    %78 = vector.load %arg7[%c0_62, %c0_63] : memref<8x200xbf16, #tpu.memory_space<vmem>>, vector<8x200xbf16>
    %cst_64 = arith.constant dense<0.000000e+00> : vector<8x400xf32>
    %79 = tpu.matmul %78, %77, %cst_64 {dimension_numbers = #tpu.dot_dimension_numbers<[1], [0], [0], [1], [0, 0, 1, 1], [], []>} : vector<8x200xbf16>, vector<200x400xbf16>, vector<8x400xf32> -> vector<8x400xf32>
    %c0_65 = arith.constant 0 : index
    %c0_66 = arith.constant 0 : index
    %80 = vector.load %arg8[%c0_65, %c0_66] : memref<8x1xf32, #tpu.memory_space<vmem>>, vector<8x1xf32>
    %81 = vector.broadcast %80 : vector<8x1xf32> to vector<8x400xf32>
    %82 = arith.addf %79, %81 : vector<8x400xf32>
    %cst_67 = arith.constant 0.000000e+00 : f32
    %83 = vector.broadcast %cst_67 : f32 to vector<8x400xf32>
    %84 = arith.maximumf %82, %83 : vector<8x400xf32>
    %c0_68 = arith.constant 0 : index
    %c24_69 = arith.constant 24 : index
    %c0_70 = arith.constant 0 : index
    %85 = vector.load %arg11[%c0_68, %c24_69, %c0_70] : memref<1x40x400xf32, #tpu.memory_space<vmem>>, vector<1x8x400xf32>
    %86 = vector.shape_cast %85 : vector<1x8x400xf32> to vector<8x400xf32>
    %87 = vector.shape_cast %84 : vector<8x400xf32> to vector<1x8x400xf32>
    tpu.vector_store %arg11[%c0_68, %c24_69, %c0_70], %87 {strides = array<i32>} : memref<1x40x400xf32, #tpu.memory_space<vmem>>, vector<1x8x400xf32>,
    %88 = arith.extf %4 : vector<8x400xbf16> to vector<8x400xf32>
    %cst_71 = arith.constant 0.000000e+00 : f32
    %89 = vector.broadcast %cst_71 : f32 to vector<8x21xf32>
    %c0_72 = arith.constant 0 : index
    %c0_73 = arith.constant 0 : index
    %90 = vector.load %arg14[%c0_72, %c0_73] : memref<8x442xf32, #tpu.memory_space<vmem>>, vector<8x21xf32>
    tpu.vector_store %arg14[%c0_72, %c0_73], %89 {strides = array<i32>} : memref<8x442xf32, #tpu.memory_space<vmem>>, vector<8x21xf32>,
    %cst_74 = arith.constant 0.000000e+00 : f32
    %91 = vector.broadcast %cst_74 : f32 to vector<8x21xf32>
    %c0_75 = arith.constant 0 : index
    %c421 = arith.constant 421 : index
    %92 = vector.load %arg14[%c0_75, %c421] : memref<8x442xf32, #tpu.memory_space<vmem>>, vector<8x21xf32>
    tpu.vector_store %arg14[%c0_75, %c421], %91 {strides = array<i32>} : memref<8x442xf32, #tpu.memory_space<vmem>>, vector<8x21xf32>,
    %cst_76 = arith.constant -1.000000e+30 : f32
    %93 = vector.shape_cast %2 : vector<1x400xi1> to vector<1x400xi1>
    %94 = vector.broadcast %93 : vector<1x400xi1> to vector<8x400xi1>
    %95 = vector.broadcast %cst_76 : f32 to vector<8x400xf32>
    %96 = arith.select %94, %88, %95 : vector<8x400xi1>, vector<8x400xf32>
    %c0_77 = arith.constant 0 : index
    %c21_78 = arith.constant 21 : index
    %97 = vector.load %arg14[%c0_77, %c21_78] : memref<8x442xf32, #tpu.memory_space<vmem>>, vector<8x400xf32>
    tpu.vector_store %arg14[%c0_77, %c21_78], %96 {strides = array<i32>} : memref<8x442xf32, #tpu.memory_space<vmem>>, vector<8x400xf32>,
    %cst_79 = arith.constant -1.000000e+30 : f32
    %98 = vector.broadcast %cst_79 : f32 to vector<8x400xf32>
    %c0_80 = arith.constant 0 : index
    %c0_81 = arith.constant 0 : index
    %99 = vector.load %arg14[%c0_80, %c0_81] : memref<8x442xf32, #tpu.memory_space<vmem>>, vector<8x400xf32>
    %100 = arith.maximumf %98, %99 : vector<8x400xf32>
    %c0_82 = arith.constant 0 : index
    %c1_83 = arith.constant 1 : index
    %101 = vector.load %arg14[%c0_82, %c1_83] : memref<8x442xf32, #tpu.memory_space<vmem>>, vector<8x400xf32>
    %102 = arith.maximumf %100, %101 : vector<8x400xf32>
    %c0_84 = arith.constant 0 : index
    %c2_85 = arith.constant 2 : index
    %103 = vector.load %arg14[%c0_84, %c2_85] : memref<8x442xf32, #tpu.memory_space<vmem>>, vector<8x400xf32>
    %104 = arith.maximumf %102, %103 : vector<8x400xf32>
    %c0_86 = arith.constant 0 : index
    %c20_87 = arith.constant 20 : index
    %105 = vector.load %arg14[%c0_86, %c20_87] : memref<8x442xf32, #tpu.memory_space<vmem>>, vector<8x400xf32>
    %106 = arith.maximumf %104, %105 : vector<8x400xf32>
    %c0_88 = arith.constant 0 : index
    %c21_89 = arith.constant 21 : index
    %107 = vector.load %arg14[%c0_88, %c21_89] : memref<8x442xf32, #tpu.memory_space<vmem>>, vector<8x400xf32>
    %108 = arith.maximumf %106, %107 : vector<8x400xf32>
    %c0_90 = arith.constant 0 : index
    %c22_91 = arith.constant 22 : index
    %109 = vector.load %arg14[%c0_90, %c22_91] : memref<8x442xf32, #tpu.memory_space<vmem>>, vector<8x400xf32>
    %110 = arith.maximumf %108, %109 : vector<8x400xf32>
    %c0_92 = arith.constant 0 : index
    %c40_93 = arith.constant 40 : index
    %111 = vector.load %arg14[%c0_92, %c40_93] : memref<8x442xf32, #tpu.memory_space<vmem>>, vector<8x400xf32>
    %112 = arith.maximumf %110, %111 : vector<8x400xf32>
    %c0_94 = arith.constant 0 : index
    %c41_95 = arith.constant 41 : index
    %113 = vector.load %arg14[%c0_94, %c41_95] : memref<8x442xf32, #tpu.memory_space<vmem>>, vector<8x400xf32>
    %114 = arith.maximumf %112, %113 : vector<8x400xf32>
    %c0_96 = arith.constant 0 : index
    %c42_97 = arith.constant 42 : index
    %115 = vector.load %arg14[%c0_96, %c42_97] : memref<8x442xf32, #tpu.memory_space<vmem>>, vector<8x400xf32>
    %116 = arith.maximumf %114, %115 : vector<8x400xf32>
    %cst_98 = arith.constant 0.000000e+00 : f32
    %117 = vector.shape_cast %2 : vector<1x400xi1> to vector<1x400xi1>
    %118 = vector.broadcast %117 : vector<1x400xi1> to vector<8x400xi1>
    %119 = vector.broadcast %cst_98 : f32 to vector<8x400xf32>
    %120 = arith.select %118, %116, %119 : vector<8x400xi1>, vector<8x400xf32>
    %121 = arith.truncf %120 : vector<8x400xf32> to vector<8x400xbf16>
    %c0_99 = arith.constant 0 : index
    %c0_100 = arith.constant 0 : index
    %122 = vector.load %arg9[%c0_99, %c0_100] : memref<8x8xbf16, #tpu.memory_space<vmem>>, vector<8x8xbf16>
    %cst_101 = arith.constant dense<0.000000e+00> : vector<8x400xf32>
    %123 = tpu.matmul %122, %121, %cst_101 {dimension_numbers = #tpu.dot_dimension_numbers<[1], [0], [0], [1], [0, 0, 1, 1], [], []>} : vector<8x8xbf16>, vector<8x400xbf16>, vector<8x400xf32> -> vector<8x400xf32>
    %c0_102 = arith.constant 0 : index
    %c0_103 = arith.constant 0 : index
    %124 = vector.load %arg10[%c0_102, %c0_103] : memref<8x1xf32, #tpu.memory_space<vmem>>, vector<8x1xf32>
    %125 = vector.broadcast %124 : vector<8x1xf32> to vector<8x400xf32>
    %126 = arith.addf %123, %125 : vector<8x400xf32>
    %cst_104 = arith.constant 0.000000e+00 : f32
    %127 = vector.broadcast %cst_104 : f32 to vector<8x400xf32>
    %128 = arith.maximumf %126, %127 : vector<8x400xf32>
    %c0_105 = arith.constant 0 : index
    %c32_106 = arith.constant 32 : index
    %c0_107 = arith.constant 0 : index
    %129 = vector.load %arg11[%c0_105, %c32_106, %c0_107] : memref<1x40x400xf32, #tpu.memory_space<vmem>>, vector<1x8x400xf32>
    %130 = vector.shape_cast %129 : vector<1x8x400xf32> to vector<8x400xf32>
    %131 = vector.shape_cast %128 : vector<8x400xf32> to vector<1x8x400xf32>
    tpu.vector_store %arg11[%c0_105, %c32_106, %c0_107], %131 {strides = array<i32>} : memref<1x40x400xf32, #tpu.memory_space<vmem>>, vector<1x8x400xf32>,
    return
  }
  func.func @transform_0(%arg0: i32) -> (i32, i32, i32) {
    %c0_i32 = arith.constant 0 : i32
    %c0_i32_0 = arith.constant 0 : i32
    %c0_i32_1 = arith.constant 0 : i32
    return %arg0, %c0_i32, %c0_i32_0 : i32, i32, i32
  }
  func.func @transform_1(%arg0: i32) -> (i32, i32) {
    %c0_i32 = arith.constant 0 : i32
    %c0_i32_0 = arith.constant 0 : i32
    %c0_i32_1 = arith.constant 0 : i32
    return %c0_i32, %c0_i32_0 : i32, i32
  }
  func.func @transform_2(%arg0: i32) -> (i32, i32) {
    %c0_i32 = arith.constant 0 : i32
    %c0_i32_0 = arith.constant 0 : i32
    %c0_i32_1 = arith.constant 0 : i32
    return %c0_i32, %c0_i32_0 : i32, i32
  }
  func.func @transform_3(%arg0: i32) -> (i32, i32) {
    %c0_i32 = arith.constant 0 : i32
    %c0_i32_0 = arith.constant 0 : i32
    %c0_i32_1 = arith.constant 0 : i32
    return %c0_i32, %c0_i32_0 : i32, i32
  }
  func.func @transform_4(%arg0: i32) -> (i32, i32) {
    %c0_i32 = arith.constant 0 : i32
    %c0_i32_0 = arith.constant 0 : i32
    %c0_i32_1 = arith.constant 0 : i32
    return %c0_i32, %c0_i32_0 : i32, i32
  }
  func.func @transform_5(%arg0: i32) -> (i32, i32) {
    %c0_i32 = arith.constant 0 : i32
    %c0_i32_0 = arith.constant 0 : i32
    %c0_i32_1 = arith.constant 0 : i32
    return %c0_i32, %c0_i32_0 : i32, i32
  }
  func.func @transform_6(%arg0: i32) -> (i32, i32) {
    %c0_i32 = arith.constant 0 : i32
    %c0_i32_0 = arith.constant 0 : i32
    %c0_i32_1 = arith.constant 0 : i32
    return %c0_i32, %c0_i32_0 : i32, i32
  }
  func.func @transform_7(%arg0: i32) -> (i32, i32) {
    %c0_i32 = arith.constant 0 : i32
    %c0_i32_0 = arith.constant 0 : i32
    %c0_i32_1 = arith.constant 0 : i32
    return %c0_i32, %c0_i32_0 : i32, i32
  }
  func.func @transform_8(%arg0: i32) -> (i32, i32) {
    %c0_i32 = arith.constant 0 : i32
    %c0_i32_0 = arith.constant 0 : i32
    %c0_i32_1 = arith.constant 0 : i32
    return %c0_i32, %c0_i32_0 : i32, i32
  }
  func.func @transform_9(%arg0: i32) -> (i32, i32) {
    %c0_i32 = arith.constant 0 : i32
    %c0_i32_0 = arith.constant 0 : i32
    %c0_i32_1 = arith.constant 0 : i32
    return %c0_i32, %c0_i32_0 : i32, i32
  }
  func.func @transform_10(%arg0: i32) -> (i32, i32, i32) {
    %c0_i32 = arith.constant 0 : i32
    %c0_i32_0 = arith.constant 0 : i32
    %c0_i32_1 = arith.constant 0 : i32
    return %arg0, %c0_i32, %c0_i32_0 : i32, i32, i32
  }
}

</mosaic_0001>

<bundles_post_ra>
// kernel: forward.1
= control target key start
LH: loop header
LB: loop body
LE: loop exit
PB: predicated region body
PF: predicated region fallthrough
CT: control target
= control target key end

     0   :  { %s2707_s13 = smov 0   ;;  %s4118_s0 = inlined_call_operand.vmem [shape: bf16[2,8,400], index: 0, kind: input, shape index: {}]   ;;  %s4119_s1 = inlined_call_operand.vmem [shape: f32[1,400], index: 1, kind: input, shape index: {}]   ;;  %s4120_s2 = inlined_call_operand.vmem [shape: bf16[24,8], index: 2, kind: input, shape index: {}]   ;;  %s4121_s3 = inlined_call_operand.vmem [shape: f32[24,1], index: 3, kind: input, shape index: {}]   ;;  %s4122_s4 = inlined_call_operand.vmem [shape: bf16[16,72], index: 4, kind: input, shape index: {}]   ;;  %s4123_s5 = inlined_call_operand.vmem [shape: f32[16,1], index: 5, kind: input, shape index: {}]   ;;  %s4124_s6 = inlined_call_operand.vmem [shape: bf16[8,200], index: 6, kind: input, shape index: {}]   ;;  %s4125_s7 = inlined_call_operand.vmem [shape: f32[8,1], index: 7, kind: input, shape index: {}]   ;;  %s4126_s8 = inlined_call_operand.vmem [shape: bf16[8,8], index: 8, kind: input, shape index: {}]   ;;  %s4127_s9 = inlined_call_operand.vmem [shape: f32[8,1], index: 9, kind: input, shape index: {}]   ;;  %s4128_s10 = inlined_call_operand.vmem [shape: f32[2,40,400], index: 10, kind: output, shape index: {}]  }
   0x1 LB: > { %s2438_s14 = sadd.s32 4294967295, %s2616_s13   ;;  %p2442_p0 = scmp.ge.s32.totalorder %s2616_s13, 1  ;;  %s2616_s13 = sphi %s2707_s13, %s20_s13  }
   0x2   : > { %p312_p1 = scmp.lt.s32.totalorder %s2616_s13, 3 }
   0x4   : > { %p313_p2 = pnand %p2442_p0, %p312_p1 }
   0x5   : > { %p350_p3 = scmp.lt.s32.totalorder (!%p313_p2), %s2438_s14, 1  ;;  %s2620_s20 = smov (!%p313_p2), 40  }
   0x6   : > { %316 = sbr.rel (%p313_p2) target bundleno = 1078 (0x436), region = 60  ;;  %s2621_s21 = smov (!%p313_p2), 42  }
   0x7   : > { %s2622_s23 = smov (!%p313_p2), 41   ;;  %s2623_s24 = smov (!%p313_p2), 22  }
   0x8   : > { %s2624_s25 = smov (!%p313_p2), 20   ;;  %s2625_s26 = smov (!%p313_p2), 2  }
   0x9   : > { %s2626_s27 = smov (!%p313_p2), 21   ;;  %s2627_s28 = smov (!%p313_p2), 1  }
   0xa   : > { %s2628_s29 = smov (!%p313_p2), 84   ;;  %s2629_s30 = smov (!%p313_p2), 82  }
   0xb   : > { %v368_v0 = vld [vmem:[%s4121_s3] sm:$0xff]  ;;  %v2618_v1 = vmov 0   ;;  %s4210_s14 = smov (!%p350_p3, %s2438_s14), 1  ;;  %v370_v2 = vld [vmem:[%s4121_s3 + $0x10] sm:$0xff]  ;;  %v369_v9 = vld [vmem:[%s4121_s3 + $0x8] sm:$0xff]  ;;  %vm411_vm0 = vcmask 1043456  }
   0xc   : > { %2522 = vset.pattern.permute.xlu0 %v2618_v1  ;;  %2523 = vset.pattern.permute.xlu1 %v2618_v1  ;;  %s2476_s19 = sshll.u32 %s4210_s14, 4  ;;  %v2477_v18 = vld [vmem:[%s4120_s2] sm:$0xff]  ;;  %vm4129_vm1 = vcmask 64512   ;;  %v796_v19 = vld [vmem:[%s4123_s5 + $0x8] sm:$0xff]  ;;  %vm4138_vm2 = vcmask 343040   ;;  %v2619_v24 = vmov 0.0  }
   0xd   : > { %373 = vperm.xlu0 %2522, %v368_v0   ;;  %2524 = vset.pattern.permute.xlu2 %v2618_v1  ;;  %s2730_s22 = scalar_lea.vmem %s4118_s0, %s2476_s19  ;;  %v367_v20 = vld [vmem:[%s4120_s2 + $0x8] sm:$0xf]  ;;  %v795_v23 = vld [vmem:[%s4123_s5] sm:$0xff]  ;;  %535 = vst.msk [vmem:[#allocation2] sm:$0xff] %vm4138_vm2, %v2619_v24  ;;  %vm544_vm3 = vcmask 474240   ;;  %s2479_s17 = smul.u32 160, %s4210_s14 }
   0xe   : > { %383 = vperm.xlu1 %2523, %v370_v2   ;;  %v363_v3 = vld [vmem:[%s2730_s22] sm:$0xff]  ;;  %v364_v4 = vld [vmem:[%s2730_s22 + $0x8] sm:$0xff]  ;;  %v391_v21 = vunpack.c.l.b16 %v367_v20  ;;  %799 = vperm.xlu2 %2524, %v795_v23   ;;  %536 = vst.msk [vmem:[#allocation2 + $0x20] sm:$0xff] %vm4138_vm2, %v2619_v24  ;;  %vm4130_vm9 = vcmask 130048   ;;  %vm992_vm10 = vcmask 687104   ;;  %vm1018_vm11 = vcmask 818304  }
   0xf   : > { %v396_v5 = vunpack.c.l.b16 %v363_v3  ;;  %v397_v6 = vunpack.c.h.b16 %v363_v3  ;;  %v398_v7 = vunpack.c.l.b16 %v364_v4  ;;  %v399_v8 = vunpack.c.h.b16 %v364_v4  ;;  %537 = vst.msk [vmem:[#allocation2 + $0x40] sm:$0xff] %vm4138_vm2, %v2619_v24  ;;  %v361_v25 = vld [vmem:[%s4119_s1] sm:$0xf]  ;;  %s2811_s19 = scalar_lea.vmem %s4128_s10, %s2479_s17  ;;  %s2630_s11 = smov 83  }
  0x10   : > { %v393_v22 = vpack.c.b16 %v391_v21, %v391_v21  ;;  %538 = vst.msk [vmem:[#allocation2 + $0x60] sm:$0xff] %vm4138_vm2, %v2619_v24  ;;  %vm362_vm4 = vcmp.ne.f32.partialorder %v361_v25, 0.0  ;;  %s2631_s12 = smov 81   ;;  %s2632_s15 = smov 64   ;;  %vm4135_vm12 = vcmask 1047872   ;;  %vm4151_vm13 = vcmask 171008  }
  0x11   : > { %v400_v10 = vpack.c.b16 %v396_v5, %v396_v5  ;;  %v401_v11 = vpack.c.b16 %v397_v6, %v397_v6  ;;  %v402_v12 = vpack.c.b16 %v398_v7, %v398_v7  ;;  %v403_v13 = vpack.c.b16 %v399_v8, %v399_v8  ;;  %539 = vst.msk [vmem:[#allocation2 + $0x80] sm:$0xff] %vm4138_vm2, %v2619_v24  ;;  %s2633_s16 = smov 80   ;;  %s2634_s17 = smov 107  }
  0x12   : > { %540 = vst.msk [vmem:[#allocation2 + $0xa0] sm:$0xff] %vm4138_vm2, %v2619_v24  ;;  %v508_v26 = vsel %vm362_vm4, 1, %v2618_v1  ;;  %vm609_vm14 = vcmask 326656   ;;  %vm4139_vm15 = vcmask 1047888   ;;  %vm4131_vm4 = vcmask 1047712   ;;  %s2635_s18 = smov 63  }
  0x13   : > { %v413_v14 = vsel %vm411_vm0, %v400_v10, 0  ;;  %v416_v15 = vsel %vm411_vm0, %v401_v11, 0  ;;  %v419_v16 = vsel %vm411_vm0, %v402_v12, 0  ;;  %v422_v17 = vsel %vm411_vm0, %v403_v13, 0  ;;  %541 = vst.msk [vmem:[#allocation2 + $0xc0] sm:$0xff] %vm4138_vm2, %v2619_v24  ;;  %s2636_s14 = smov 62  }
  0x14   : > { %431 = vmatpush.bf16.msra.mxu0 %v413_v14  ;;  %449 = vmatpush.bf16.msra.mxu1 %v416_v15  ;;  %542 = vst.msk [vmem:[#allocation2 + $0xe0] sm:$0xff] %vm4138_vm2, %v2619_v24  ;;  %v509_v28 = vperm.slane %v508_v26, 0  ;;  %v510_v29 = vperm.slane %v508_v26, 1  ;;  %v511_v40 = vperm.slane %v508_v26, 2  ;;  %v512_v41 = vperm.slane %v508_v26, 3 }
  0x15   : > { %378 = vperm.xlu0 %2522, %v369_v9   ;;  %467 = vmatpush.bf16.msra.mxu2 %v419_v16  ;;  %553 = vst.msk [vmem:[#allocation2 + $0x118] sm:$0xff] %vm544_vm3, %v2619_v24 }
  0x16   : > { %485 = vmatpush.bf16.msra.mxu3 %v422_v17  ;;  %545 = vst.msk [vmem:[#allocation2 + $0x18] sm:$0xff] %vm544_vm3, %v2619_v24  ;;  %vm2800_vm5 = vcmp.eq.s32.totalorder %v509_v28, 1  ;;  %vm2804_vm6 = vcmp.eq.s32.totalorder %v510_v29, 1  ;;  %vm2819_vm7 = vcmp.eq.s32.totalorder %v511_v40, 1  ;;  %vm2823_vm8 = vcmp.eq.s32.totalorder %v512_v41, 1 }
  0x17   : > { %2450 = vmatmul.msk.bf16.vlgmr.msra.gmra.mxu0 %vm4129_vm1, %v2477_v18  ;;  %2452 = vmatmul.msk.bf16.vlgmr.msra.gmra.mxu1 %vm4129_vm1, %v2477_v18  ;;  %546 = vst.msk [vmem:[#allocation2 + $0x38] sm:$0xff] %vm544_vm3, %v2619_v24 }
  0x18   : > { %2454 = vmatmul.msk.bf16.vlgmr.msra.gmra.mxu2 %vm4129_vm1, %v2477_v18  ;;  %547 = vst.msk [vmem:[#allocation2 + $0x58] sm:$0xff] %vm544_vm3, %v2619_v24 }
  0x19   : > { %2456 = vmatmul.msk.bf16.vlgmr.msra.gmra.mxu3 %vm4129_vm1, %v2477_v18  ;;  %548 = vst.msk [vmem:[#allocation2 + $0x78] sm:$0xff] %vm544_vm3, %v2619_v24 }
  0x1a   : > { %549 = vst.msk [vmem:[#allocation2 + $0x98] sm:$0xff] %vm544_vm3, %v2619_v24 }
  0x1b   : > { %550 = vst.msk [vmem:[#allocation2 + $0xb8] sm:$0xff] %vm544_vm3, %v2619_v24 }
  0x1c   : > { %551 = vst.msk [vmem:[#allocation2 + $0xd8] sm:$0xff] %vm544_vm3, %v2619_v24 }
  0x1d   : > { %804 = vperm.xlu0 %2522, %v796_v19   ;;  %552 = vst.msk [vmem:[#allocation2 + $0xf8] sm:$0xff] %vm544_vm3, %v2619_v24  ;;  %vm4132_vm3 = vcmask 1047728  }
  0x1e   : > { %995 = vst.msk [vmem:[#allocation3 + $0x40] sm:$0xff] %vm992_vm10, %v2619_v24 }
  0x1f   : > { %993 = vst.msk [vmem:[#allocation3] sm:$0xff] %vm992_vm10, %v2619_v24 }
  0x20   : > { %994 = vst.msk [vmem:[#allocation3 + $0x20] sm:$0xff] %vm992_vm10, %v2619_v24 }
  0x21   : > { %996 = vst.msk [vmem:[#allocation3 + $0x60] sm:$0xff] %vm992_vm10, %v2619_v24 }
  0x22   : > { %997 = vst.msk [vmem:[#allocation3 + $0x80] sm:$0xff] %vm992_vm10, %v2619_v24 }
  0x23   : > { %998 = vst.msk [vmem:[#allocation3 + $0xa0] sm:$0xff] %vm992_vm10, %v2619_v24 }
  0x24   : > { %999 = vst.msk [vmem:[#allocation3 + $0xc0] sm:$0xff] %vm992_vm10, %v2619_v24 }
  0x25   : > { %1000 = vst.msk [vmem:[#allocation3 + $0xe0] sm:$0xff] %vm992_vm10, %v2619_v24 }
  0x26   : > { %1001 = vst.msk [vmem:[#allocation3 + $0x100] sm:$0xff] %vm992_vm10, %v2619_v24 }
  0x27   : > { %2451 = vmatmul.msk.bf16.gmra.mxu0 %vm4129_vm1, %v393_v22  ;;  %2453 = vmatmul.msk.bf16.gmra.mxu1 %vm4129_vm1, %v393_v22  ;;  %1002 = vst.msk [vmem:[#allocation3 + $0x120] sm:$0xff] %vm992_vm10, %v2619_v24 }
  0x28   : > { %2455 = vmatmul.msk.bf16.gmra.mxu2 %vm4129_vm1, %v393_v22  ;;  %1003 = vst.msk [vmem:[#allocation3 + $0x140] sm:$0xff] %vm992_vm10, %v2619_v24 }
  0x29   : > { %2457 = vmatmul.msk.bf16.gmra.mxu3 %vm4129_vm1, %v393_v22  ;;  %1004 = vst.msk [vmem:[#allocation3 + $0x160] sm:$0xff] %vm992_vm10, %v2619_v24  ;;  %vm4133_vm1 = vcmask 1047880  }
  0x2a   : > { %1005 = vst.msk [vmem:[#allocation3 + $0x180] sm:$0xff] %vm992_vm10, %v2619_v24 }
  0x2b   : > { %1006 = vst.msk [vmem:[#allocation3 + $0x1a0] sm:$0xff] %vm992_vm10, %v2619_v24 }
  0x2c   : > { %1007 = vst.msk [vmem:[#allocation3 + $0x1c0] sm:$0xff] %vm992_vm10, %v2619_v24 }
  0x2d   : > { %1008 = vst.msk [vmem:[#allocation3 + $0x1e0] sm:$0xff] %vm992_vm10, %v2619_v24 }
  0x2e   : > { %1009 = vst.msk [vmem:[#allocation3 + $0x200] sm:$0xff] %vm992_vm10, %v2619_v24 }
  0x2f   : > { %1010 = vst.msk [vmem:[#allocation3 + $0x220] sm:$0xff] %vm992_vm10, %v2619_v24 }
  0x30   : > { %1011 = vst.msk [vmem:[#allocation3 + $0x240] sm:$0xff] %vm992_vm10, %v2619_v24 }
  0x31   : > { %1012 = vst.msk [vmem:[#allocation3 + $0x260] sm:$0xff] %vm992_vm10, %v2619_v24 }
  0x32   : > { %1013 = vst.msk [vmem:[#allocation3 + $0x280] sm:$0xff] %vm992_vm10, %v2619_v24 }
  0x33   : > { %1014 = vst.msk [vmem:[#allocation3 + $0x2a0] sm:$0xff] %vm992_vm10, %v2619_v24 }
  0x34   : > { %1015 = vst.msk [vmem:[#allocation3 + $0x2c0] sm:$0xff] %vm992_vm10, %v2619_v24 }
  0x35   : > { %1016 = vst.msk [vmem:[#allocation3 + $0x2e0] sm:$0xff] %vm992_vm10, %v2619_v24 }
  0x36   : > { %1017 = vst.msk [vmem:[#allocation3 + $0x300] sm:$0xff] %vm992_vm10, %v2619_v24 }
  0x37   : > { %1019 = vst.msk [vmem:[#allocation3 + $0x18] sm:$0xff] %vm1018_vm11, %v2619_v24 }
  0x38   : > { %1020 = vst.msk [vmem:[#allocation3 + $0x38] sm:$0xff] %vm1018_vm11, %v2619_v24 }
  0x39   : > { %1021 = vst.msk [vmem:[#allocation3 + $0x58] sm:$0xff] %vm1018_vm11, %v2619_v24 }
  0x3a   : > { %1022 = vst.msk [vmem:[#allocation3 + $0x78] sm:$0xff] %vm1018_vm11, %v2619_v24 }
  0x3b   : > { %1023 = vst.msk [vmem:[#allocation3 + $0x98] sm:$0xff] %vm1018_vm11, %v2619_v24 }
  0x3c   : > { %1024 = vst.msk [vmem:[#allocation3 + $0xb8] sm:$0xff] %vm1018_vm11, %v2619_v24 }
  0x3d   : > { %1025 = vst.msk [vmem:[#allocation3 + $0xd8] sm:$0xff] %vm1018_vm11, %v2619_v24 }
  0x3e   : > { %1026 = vst.msk [vmem:[#allocation3 + $0xf8] sm:$0xff] %vm1018_vm11, %v2619_v24 }
  0x3f   : > { %1027 = vst.msk [vmem:[#allocation3 + $0x118] sm:$0xff] %vm1018_vm11, %v2619_v24 }
  0x40   : > { %1028 = vst.msk [vmem:[#allocation3 + $0x138] sm:$0xff] %vm1018_vm11, %v2619_v24 }
  0x41   : > { %1029 = vst.msk [vmem:[#allocation3 + $0x158] sm:$0xff] %vm1018_vm11, %v2619_v24 }
  0x42   : > { %1030 = vst.msk [vmem:[#allocation3 + $0x178] sm:$0xff] %vm1018_vm11, %v2619_v24 }
  0x43   : > { %1031 = vst.msk [vmem:[#allocation3 + $0x198] sm:$0xff] %vm1018_vm11, %v2619_v24 }
  0x44   : > { %1032 = vst.msk [vmem:[#allocation3 + $0x1b8] sm:$0xff] %vm1018_vm11, %v2619_v24 }
  0x45   : > { %1033 = vst.msk [vmem:[#allocation3 + $0x1d8] sm:$0xff] %vm1018_vm11, %v2619_v24 }
  0x46   : > { %1034 = vst.msk [vmem:[#allocation3 + $0x1f8] sm:$0xff] %vm1018_vm11, %v2619_v24 }
  0x47   : > { %1035 = vst.msk [vmem:[#allocation3 + $0x218] sm:$0xff] %vm1018_vm11, %v2619_v24 }
  0x48   : > { %1036 = vst.msk [vmem:[#allocation3 + $0x238] sm:$0xff] %vm1018_vm11, %v2619_v24 }
  0x49   : > { %1037 = vst.msk [vmem:[#allocation3 + $0x258] sm:$0xff] %vm1018_vm11, %v2619_v24 }
  0x4a   : > { %1038 = vst.msk [vmem:[#allocation3 + $0x278] sm:$0xff] %vm1018_vm11, %v2619_v24 }
  0x4b   : > { %1039 = vst.msk [vmem:[#allocation3 + $0x298] sm:$0xff] %vm1018_vm11, %v2619_v24 }
  0x4c   : > { %1040 = vst.msk [vmem:[#allocation3 + $0x2b8] sm:$0xff] %vm1018_vm11, %v2619_v24 }
  0x4d   : > { %1041 = vst.msk [vmem:[#allocation3 + $0x2d8] sm:$0xff] %vm1018_vm11, %v2619_v24 }
  0x4e   : > { %1042 = vst.msk [vmem:[#allocation3 + $0x2f8] sm:$0xff] %vm1018_vm11, %v2619_v24 }
  0x4f   : > { %1043 = vst.msk [vmem:[#allocation3 + $0x318] sm:$0xff] %vm1018_vm11, %v2619_v24  ;;  %vm587_vm11 = vcmask 334848  }
  0x50   : > { %2091 = vst.msk [vmem:[#allocation4] sm:$0xff] %vm4151_vm13, %v2619_v24 }
  0x68   : > { %v2996_v23 = vpop.permute.xlu2 %799 }
  0x7f   : > { %v374_v27 = vpop.permute.xlu0 %373 }
  0x80   : > { %v2888_v6 = vpop.permute.xlu1 %383 }
  0x87   : > { %v379_v42 = vpop.permute.xlu0 %378 }
  0x94   : > { %v433_v30 = vpop.f32.mrf.mxu0  ;;  %v451_v31 = vpop.f32.mrf.mxu1 }
  0x95   : > { %v434_v32 = vadd.f32 %v433_v30, %v374_v27  ;;  %v452_v33 = vadd.f32 %v451_v31, %v374_v27  ;;  %v3072_v30 = vpop.permute.xlu0 %804 }
  0x97   : > { %v496_v36 = vmax.f32 %v434_v32, 0.0  ;;  %v497_v37 = vmax.f32 %v452_v33, 0.0 }
  0x99   : > { %v517_v38 = vsel %vm2800_vm5, %v496_v36, 0.0  ;;  %v518_v39 = vsel %vm2804_vm6, %v497_v37, 0.0 }
  0x9a   : > { %529 = vst [vmem:[%s2811_s19] sm:$0xff] %v517_v38 }
  0x9b   : > { %530 = vst [vmem:[%s2811_s19 + $0x8] sm:$0xff] %v518_v39  ;;  %v469_v43 = vpop.f32.mrf.mxu2 }
  0x9c   : > { %v487_v44 = vpop.f32.mrf.mxu3  ;;  %v470_v45 = vadd.f32 %v469_v43, %v374_v27  ;;  %v435_v47 = vpop.f32.mrf.mxu0 }
  0x9d   : > { %v488_v46 = vadd.f32 %v487_v44, %v374_v27  ;;  %v453_v48 = vpop.f32.mrf.mxu1  ;;  %v436_v51 = vadd.f32 %v435_v47, %v379_v42 }
  0x9e   : > { %v454_v52 = vadd.f32 %v453_v48, %v379_v42  ;;  %v498_v53 = vmax.f32 %v470_v45, 0.0 }
  0x9f   : > { %v499_v54 = vmax.f32 %v488_v46, 0.0  ;;  %v500_v55 = vmax.f32 %v436_v51, 0.0 }
  0xa0   : > { %v501_v56 = vmax.f32 %v454_v52, 0.0  ;;  %v519_v57 = vsel %vm2819_vm7, %v498_v53, 0.0 }
  0xa1   : > { %v520_v58 = vsel %vm2823_vm8, %v499_v54, 0.0  ;;  %531 = vst [vmem:[%s2811_s19 + $0x10] sm:$0xff] %v519_v57  ;;  %v2834_v59 = vsel %vm2800_vm5, %v500_v55, 0.0 }
  0xa2   : > { %v2838_v60 = vsel %vm2804_vm6, %v501_v56, 0.0  ;;  %533 = vst.msk [vmem:[%s2811_s19 + $0x18] sm:$0xff] %vm4130_vm9, %v520_v58  ;;  %558 = vrot.lane.b32.xlu1 %v2834_v59, %s2621_s21  ;;  %v789_v40 = vpack.c.bf16 %v2834_v59, %v2834_v59 }
  0xa3   : > { %603 = vrot.lane.b32.xlu0 %v2838_v60, %s2620_s20  ;;  %560 = vrot.lane.b32.xlu2 %v2838_v60, %s2621_s21  ;;  %v471_v61 = vpop.f32.mrf.mxu2  ;;  %v790_v32 = vpack.c.bf16 %v2838_v60, %v2838_v60 }
  0xa4   : > { %v489_v62 = vpop.f32.mrf.mxu3  ;;  %v472_v63 = vadd.f32 %v471_v61, %v379_v42  ;;  %v438_v5 = vpop.f32.mrf.mxu0 }
  0xa5   : > { %v490_v0 = vadd.f32 %v489_v62, %v379_v42  ;;  %v456_v8 = vpop.f32.mrf.mxu1  ;;  %v439_v20 = vadd.f32 %v438_v5, %v2888_v6 }
  0xa6   : > { %v502_v1 = vmax.f32 %v472_v63, 0.0  ;;  %v457_v10 = vadd.f32 %v456_v8, %v2888_v6 }
  0xa7   : > { %v503_v2 = vmax.f32 %v490_v0, 0.0  ;;  %v504_v21 = vmax.f32 %v439_v20, 0.0 }
  0xa8   : > { %v2850_v3 = vsel %vm2819_vm7, %v502_v1, 0.0  ;;  %v505_v13 = vmax.f32 %v457_v10, 0.0 }
  0xa9   : > { %v2854_v4 = vsel %vm2823_vm8, %v503_v2, 0.0  ;;  %v2973_v22 = vsel %vm2800_vm5, %v504_v21, 0.0 }
  0xaa   : > { %736 = vst.msk [vmem:[#allocation2 + $0x118] sm:$0xff] %vm4130_vm9, %v2854_v4  ;;  %579 = vrot.lane.b32.xlu1 %v2834_v59, %s2622_s23  ;;  %v2896_v15 = vsel %vm2804_vm6, %v505_v13, 0.0 }
  0xab   : > { %581 = vrot.lane.b32.xlu2 %v2838_v60, %s2622_s23  ;;  %623 = vrot.lane.b32.xlu0 %v2834_v59, %s2623_s24  ;;  %v474_v9 = vpop.f32.mrf.mxu2  ;;  %1548 = vst [vmem:[#allocation3 + $0x308] sm:$0xff] %v2896_v15 }
  0xac   : > { %v440_v7 = vpop.f32.mrf.mxu0  ;;  %v475_v11 = vadd.f32 %v474_v9, %v2888_v6  ;;  %v2892_v12 = vpop.f32.mrf.mxu3  ;;  %1547 = vst [vmem:[#allocation3 + $0x300] sm:$0xff] %v2973_v22 }
  0xad   : > { %v458_v17 = vpop.f32.mrf.mxu1  ;;  %v493_v25 = vadd.f32 %v2892_v12, %v2888_v6  ;;  %v791_v12 = vpack.c.bf16 %v2850_v3, %v2850_v3 }
  0xae   : > { %v506_v14 = vmax.f32 %v475_v11, 0.0 }
  0xaf   : > { %v507_v27 = vmax.f32 %v493_v25, 0.0 }
  0xb0   : > { %v2900_v16 = vsel %vm2819_vm7, %v506_v14, 0.0 }
  0xb1   : > { %1549 = vst [vmem:[#allocation3 + $0x310] sm:$0xff] %v2900_v16  ;;  %v3054_v28 = vsel %vm2823_vm8, %v507_v27, 0.0  ;;  %v772_v7 = vld [vmem:[#allocation2 + $0x118] sm:$0xff] }
  0xb2   : > { %625 = vrot.lane.b32.xlu1 %v2838_v60, %s2623_s24  ;;  %1550 = vst.msk [vmem:[#allocation3 + $0x318] sm:$0xff] %vm4130_vm9, %v3054_v28  ;;  %vm4147_vm9 = vcmask 162816   ;;  %v792_v11 = vpack.c.bf16 %v772_v7, %v772_v7 }
  0xb3   : > { %669 = vrot.lane.b32.xlu0 %v2838_v60, %s2624_s25  ;;  %601 = vrot.lane.b32.xlu2 %v2834_v59, %s2620_s20  ;;  %v476_v18 = vpop.f32.mrf.mxu2 }
  0xb4   : > { %v494_v19 = vpop.f32.mrf.mxu3 }
  0xba   : > { %645 = vrot.lane.b32.xlu1 %v2834_v59, %s2626_s27 }
  0xbb   : > { %689 = vrot.lane.b32.xlu0 %v2834_v59, %s2625_s26  ;;  %647 = vrot.lane.b32.xlu2 %v2838_v60, %s2626_s27 }
  0xc2   : > { %691 = vrot.lane.b32.xlu1 %v2838_v60, %s2625_s26 }
  0xc3   : > { %564 = vrot.lane.b32.xlu0 %v2854_v4, %s2621_s21  ;;  %667 = vrot.lane.b32.xlu2 %v2834_v59, %s2624_s25 }
  0xca   : > { %711 = vrot.lane.b32.xlu1 %v2834_v59, %s2627_s28 }
  0xcb   : > { %583 = vrot.lane.b32.xlu0 %v2850_v3, %s2622_s23  ;;  %713 = vrot.lane.b32.xlu2 %v2838_v60, %s2627_s28 }
  0xd2   : > { %585 = vrot.lane.b32.xlu1 %v2854_v4, %s2622_s23 }
  0xd3   : > { %629 = vrot.lane.b32.xlu0 %v2854_v4, %s2623_s24  ;;  %562 = vrot.lane.b32.xlu2 %v2850_v3, %s2621_s21 }
  0xda   : > { %605 = vrot.lane.b32.xlu1 %v2850_v3, %s2620_s20 }
  0xdb   : > { %649 = vrot.lane.b32.xlu0 %v2850_v3, %s2626_s27  ;;  %607 = vrot.lane.b32.xlu2 %v2854_v4, %s2620_s20 }
  0xe2   : > { %651 = vrot.lane.b32.xlu1 %v2854_v4, %s2626_s27 }
  0xe3   : > { %695 = vrot.lane.b32.xlu0 %v2854_v4, %s2625_s26  ;;  %627 = vrot.lane.b32.xlu2 %v2850_v3, %s2623_s24 }
  0xea   : > { %671 = vrot.lane.b32.xlu1 %v2850_v3, %s2624_s25 }
  0xeb   : > { %715 = vrot.lane.b32.xlu0 %v2850_v3, %s2627_s28  ;;  %673 = vrot.lane.b32.xlu2 %v2854_v4, %s2624_s25 }
  0xf2   : > { %717 = vrot.lane.b32.xlu1 %v2854_v4, %s2627_s28 }
  0xf3   : > { %1048 = vrot.lane.b32.xlu0 %v2973_v22, %s2628_s29  ;;  %693 = vrot.lane.b32.xlu2 %v2850_v3, %s2625_s26 }
  0xfa   : > { %1050 = vrot.lane.b32.xlu1 %v2896_v15, %s2628_s29 }
  0xfb   : > { %1093 = vrot.lane.b32.xlu0 %v2896_v15, %s2629_s30  ;;  %1071 = vrot.lane.b32.xlu2 %v2896_v15, %s2630_s11 }
  0xfd   : > { %v3028_v26 = vpop.permute.xlu2 %560 }
 0x102   : > { %1069 = vrot.lane.b32.xlu1 %v2973_v22, %s2630_s11 }
 0x103   : > { %1113 = vrot.lane.b32.xlu0 %v2973_v22, %s2631_s12  ;;  %1091 = vrot.lane.b32.xlu2 %v2973_v22, %s2629_s30 }
 0x105   : > { %v3056_v29 = vpop.permute.xlu2 %581 }
 0x10a   : > { %1115 = vrot.lane.b32.xlu1 %v2896_v15, %s2631_s12 }
 0x10b   : > { %1159 = vrot.lane.b32.xlu0 %v2896_v15, %s2632_s15  ;;  %1137 = vrot.lane.b32.xlu2 %v2896_v15, %s2633_s16 }
 0x10d   : > { %v602_v31 = vpop.permute.xlu2 %601 }
 0x10e   : > { %618 = vst.msk [vmem:[#allocation2 + $0x40] sm:$0xff] %vm4135_vm12, %v602_v31  ;;  %vm4145_vm12 = vcmask 15360  }
 0x112   : > { %1135 = vrot.lane.b32.xlu1 %v2973_v22, %s2633_s16 }
 0x113   : > { %866 = vrot.lane.b32.xlu0 %v790_v32, %s2634_s17  ;;  %1157 = vrot.lane.b32.xlu2 %v2973_v22, %s2632_s15 }
 0x114   : > { %v559_v38 = vpop.permute.xlu1 %558 }
 0x115   : > { %v3084_v33 = vpop.permute.xlu0 %603  ;;  %v3086_v36 = vpop.permute.xlu2 %647  ;;  %v3094_v39 = vsel %vm4138_vm2, %v559_v38, %v3028_v26  ;;  %574 = vst.msk [vmem:[#allocation2] sm:$0xff] %vm4139_vm15, %v559_v38  ;;  %vm4152_vm15 = vcmask 465920  }
 0x116   : > { %v3090_v37 = vsel %vm609_vm14, %v602_v31, %v3084_v33 }
 0x11a   : > { %1075 = vrot.lane.b32.xlu1 %v3054_v28, %s2630_s11 }
 0x11b   : > { %1054 = vrot.lane.b32.xlu0 %v3054_v28, %s2628_s29  ;;  %864 = vrot.lane.b32.xlu2 %v789_v40, %s2634_s17 }
 0x11c   : > { %v580_v43 = vpop.permute.xlu1 %579 }
 0x11d   : > { %v624_v41 = vpop.permute.xlu0 %623  ;;  %v668_v42 = vpop.permute.xlu2 %667  ;;  %v3108_v44 = vsel %vm587_vm11, %v580_v43, %v3056_v29  ;;  %596 = vst.msk [vmem:[#allocation2 + $0x20] sm:$0xff] %vm4133_vm1, %v580_v43  ;;  %vm4136_vm1 = vcmask 1047720  }
 0x11e   : > { %640 = vst.msk [vmem:[#allocation2 + $0x60] sm:$0xff] %vm4132_vm3, %v624_v41  ;;  %v774_v45 = vpack.c.bf16 %v3108_v44, %v3094_v39  ;;  %vm4134_vm3 = vcmask 1047568  }
 0x11f   : > { %684 = vst.msk [vmem:[#allocation2 + $0xa0] sm:$0xff] %vm4131_vm4, %v668_v42  ;;  %vm4142_vm4 = vcmask 179200  }
 0x122   : > { %1095 = vrot.lane.b32.xlu1 %v2900_v16, %s2629_s30 }
 0x123   : > { %1073 = vrot.lane.b32.xlu0 %v2900_v16, %s2630_s11  ;;  %1052 = vrot.lane.b32.xlu2 %v2900_v16, %s2628_s29  ;;  %s2637_s29 = smov 61   ;;  %s2639_s11 = smov 44  }
 0x124   : > { %v626_v51 = vpop.permute.xlu1 %625 }
 0x125   : > { %v3119_v46 = vpop.permute.xlu0 %669  ;;  %v3121_v47 = vpop.permute.xlu2 %713  ;;  %v3128_v52 = vsel %vm4142_vm4, %v624_v41, %v626_v51 }
 0x126   : > { %v3125_v48 = vsel %vm4147_vm9, %v668_v42, %v3119_v46  ;;  %v778_v53 = vpack.c.bf16 %v3128_v52, %v3090_v37 }
 0x12a   : > { %1180 = vrot.lane.b32.xlu1 %v2896_v15, %s2635_s18 }
 0x12b   : > { %1119 = vrot.lane.b32.xlu0 %v3054_v28, %s2631_s12  ;;  %1097 = vrot.lane.b32.xlu2 %v3054_v28, %s2629_s30  ;;  %s2638_s30 = smov 60  }
 0x12c   : > { %v646_v57 = vpop.permute.xlu1 %645 }
 0x12d   : > { %v690_v54 = vpop.permute.xlu0 %689  ;;  %v563_v55 = vpop.permute.xlu2 %562  ;;  %v3145_v58 = vsel %vm4151_vm13, %v646_v57, %v3086_v36  ;;  %662 = vst.msk [vmem:[#allocation2 + $0x80] sm:$0xff] %vm4136_vm1, %v646_v57  ;;  %vm4149_vm1 = vcmask 7168  }
 0x12e   : > { %706 = vst.msk [vmem:[#allocation2 + $0xc0] sm:$0xff] %vm4134_vm3, %v690_v54  ;;  %v3141_v56 = vsel %vm4138_vm2, %v3028_v26, %v563_v55  ;;  %v782_v59 = vpack.c.bf16 %v3125_v48, %v3145_v58  ;;  %vm4137_vm3 = vcmask 474112  }
 0x132   : > { %1141 = vrot.lane.b32.xlu1 %v3054_v28, %s2633_s16 }
 0x133   : > { %1139 = vrot.lane.b32.xlu0 %v2900_v16, %s2633_s16  ;;  %1117 = vrot.lane.b32.xlu2 %v2900_v16, %s2631_s12  ;;  %s2640_s12 = smov 43  }
 0x134   : > { %v692_v63 = vpop.permute.xlu1 %691 }
 0x135   : > { %v565_v60 = vpop.permute.xlu0 %564  ;;  %v608_v61 = vpop.permute.xlu2 %607  ;;  %v3159_v0 = vsel %vm4145_vm12, %v690_v54, %v692_v63  ;;  %v761_v37 = vld [vmem:[#allocation2 + $0xc0] sm:$0xff] }
 0x136   : > { %v568_v62 = vsel %vm4138_vm2, %v563_v55, %v565_v60  ;;  %vm4141_vm2 = vcmask 310272  }
 0x137   : > { %578 = vst.msk [vmem:[#allocation2 + $0x18] sm:$0xff] %vm4137_vm3, %v568_v62  ;;  %vm4140_vm3 = vcmask 1047560  }
 0x13a   : > { %1161 = vrot.lane.b32.xlu1 %v2900_v16, %s2632_s15 }
 0x13b   : > { %1178 = vrot.lane.b32.xlu0 %v2973_v22, %s2635_s18  ;;  %1163 = vrot.lane.b32.xlu2 %v3054_v28, %s2632_s15 }
 0x13c   : > { %v712_v6 = vpop.permute.xlu1 %711 }
 0x13d   : > { %v584_v1 = vpop.permute.xlu0 %583  ;;  %v628_v2 = vpop.permute.xlu2 %627  ;;  %v3176_v8 = vsel %vm4149_vm1, %v712_v6, %v3121_v47  ;;  %728 = vst.msk [vmem:[#allocation2 + $0xe0] sm:$0xff] %vm4140_vm3, %v712_v6  ;;  %vm4143_vm3 = vcmask 457728  }
 0x13e   : > { %v3169_v4 = vsel %vm587_vm11, %v3056_v29, %v584_v1  ;;  %v3172_v5 = vsel %vm4142_vm4, %v626_v51, %v628_v2  ;;  %v786_v10 = vpack.c.bf16 %v3176_v8, %v3159_v0 }
 0x13f   : > { %v775_v9 = vpack.c.bf16 %v3169_v4, %v3141_v56 }
 0x142   : > { %868 = vrot.lane.b32.xlu1 %v791_v12, %s2634_s17 }
 0x143   : > { %1184 = vrot.lane.b32.xlu0 %v3054_v28, %s2635_s18  ;;  %870 = vrot.lane.b32.xlu2 %v792_v11, %s2634_s17 }
 0x144   : > { %v586_v18 = vpop.permute.xlu1 %585 }
 0x145   : > { %v630_v13 = vpop.permute.xlu0 %629  ;;  %v674_v14 = vpop.permute.xlu2 %673  ;;  %v590_v19 = vsel %vm587_vm11, %v584_v1, %v586_v18 }
 0x146   : > { %v634_v17 = vsel %vm4142_vm4, %v628_v2, %v630_v13  ;;  %600 = vst.msk [vmem:[#allocation2 + $0x38] sm:$0xff] %vm4152_vm15, %v590_v19  ;;  %vm4150_vm4 = vcmask 302080   ;;  %vm1067_vm15 = vcmask 818176  }
 0x147   : > { %644 = vst.msk [vmem:[#allocation2 + $0x78] sm:$0xff] %vm4141_vm2, %v634_v17  ;;  %vm4144_vm2 = vcmask 146432  }
 0x14a   : > { %1200 = vrot.lane.b32.xlu1 %v2973_v22, %s2636_s14 }
 0x14b   : > { %1204 = vrot.lane.b32.xlu0 %v2900_v16, %s2636_s14  ;;  %1182 = vrot.lane.b32.xlu2 %v2900_v16, %s2635_s18 }
 0x14c   : > { %v606_v26 = vpop.permute.xlu1 %605 }
 0x14d   : > { %v650_v3 = vpop.permute.xlu0 %649  ;;  %v694_v20 = vpop.permute.xlu2 %693  ;;  %v3206_v27 = vsel %vm609_vm14, %v3084_v33, %v606_v26  ;;  %v612_v29 = vsel %vm609_vm14, %v606_v26, %v608_v61 }
 0x14e   : > { %v3199_v21 = vsel %vm4151_vm13, %v3086_v36, %v650_v3  ;;  %v3202_v25 = vsel %vm4145_vm12, %v692_v63, %v694_v20  ;;  %v779_v31 = vpack.c.bf16 %v3172_v5, %v3206_v27  ;;  %622 = vst.msk [vmem:[#allocation2 + $0x58] sm:$0xff] %vm4143_vm3, %v612_v29  ;;  %vm1107_vm3 = vcmask 1048208   ;;  %v753_v29 = vld [vmem:[#allocation2 + $0x80] sm:$0xff] }
 0x152   : > { %1206 = vrot.lane.b32.xlu1 %v3054_v28, %s2636_s14 }
 0x153   : > { %1224 = vrot.lane.b32.xlu0 %v2896_v15, %s2637_s29  ;;  %1202 = vrot.lane.b32.xlu2 %v2896_v15, %s2636_s14  ;;  %s2649_s14 = smov 87  }
 0x154   : > { %v652_v38 = vpop.permute.xlu1 %651 }
 0x155   : > { %v696_v32 = vpop.permute.xlu0 %695  ;;  %v3216_v36 = vpop.permute.xlu2 %1071  ;;  %v656_v40 = vsel %vm4151_vm13, %v650_v3, %v652_v38  ;;  %vm1151_vm13 = vcmask 1048192  }
 0x156   : > { %v700_v33 = vsel %vm4145_vm12, %v694_v20, %v696_v32  ;;  %666 = vst.msk [vmem:[#allocation2 + $0x98] sm:$0xff] %vm4150_vm4, %v656_v40  ;;  %vm4148_vm12 = vcmask 138240   ;;  %vm1143_vm4 = vcmask 654336  }
 0x157   : > { %710 = vst.msk [vmem:[#allocation2 + $0xd8] sm:$0xff] %vm4144_vm2, %v700_v33  ;;  %vm4146_vm2 = vcmask 293888   ;;  %v757_v33 = vld [vmem:[#allocation2 + $0xa0] sm:$0xff] }
 0x158   : > { %v781_v38 = vpack.c.bf16 %v757_v33, %v753_v29  ;;  %v765_v29 = vld [vmem:[#allocation2 + $0xe0] sm:$0xff] }
 0x15a   : > { %1226 = vrot.lane.b32.xlu1 %v2900_v16, %s2637_s29 }
 0x15b   : > { %1244 = vrot.lane.b32.xlu0 %v2973_v22, %s2638_s30  ;;  %1222 = vrot.lane.b32.xlu2 %v2973_v22, %s2637_s29 }
 0x15c   : > { %v672_v51 = vpop.permute.xlu1 %671 }
 0x15d   : > { %v716_v41 = vpop.permute.xlu0 %715  ;;  %v1092_v42 = vpop.permute.xlu2 %1091  ;;  %v3233_v54 = vsel %vm4147_vm9, %v3119_v46, %v672_v51  ;;  %v678_v55 = vsel %vm4147_vm9, %v672_v51, %v674_v14  ;;  %vm1173_vm9 = vcmask 1048064  }
 0x15e   : > { %v3229_v43 = vsel %vm4149_vm1, %v3121_v47, %v716_v41  ;;  %1108 = vst.msk [vmem:[#allocation3 + $0x40] sm:$0xff] %vm1107_vm3, %v1092_v42  ;;  %v783_v60 = vpack.c.bf16 %v3233_v54, %v3199_v21  ;;  %vm1063_vm3 = vcmask 1048224   ;;  %v764_v5 = vld [vmem:[#allocation2 + $0xd8] sm:$0xff] }
 0x15f   : > { %v787_v57 = vpack.c.bf16 %v3229_v43, %v3202_v25  ;;  %688 = vst.msk [vmem:[#allocation2 + $0xb8] sm:$0xff] %vm4146_vm2, %v678_v55  ;;  %vm1099_vm2 = vcmask 670720   ;;  %v752_v43 = vld [vmem:[#allocation2 + $0x78] sm:$0xff] }
 0x162   : > { %1246 = vrot.lane.b32.xlu1 %v2896_v15, %s2638_s30 }
 0x163   : > { %1250 = vrot.lane.b32.xlu0 %v3054_v28, %s2638_s30  ;;  %1228 = vrot.lane.b32.xlu2 %v3054_v28, %s2637_s29  ;;  %s2650_s29 = smov 88  }
 0x164   : > { %v718_v61 = vpop.permute.xlu1 %717 }
 0x165   : > { %v1049_v46 = vpop.permute.xlu0 %1048  ;;  %v3245_v47 = vpop.permute.xlu2 %1137  ;;  %v722_v62 = vsel %vm4149_vm1, %v716_v41, %v718_v61  ;;  %vm1085_vm1 = vcmask 1048216   ;;  %v741_v61 = vld [vmem:[#allocation2 + $0x20] sm:$0xff] }
 0x166   : > { %1064 = vst.msk [vmem:[#allocation3] sm:$0xff] %vm1063_vm3, %v1049_v46  ;;  %vm1129_vm3 = vcmask 1048200  }
 0x167   : > { %732 = vst.msk [vmem:[#allocation2 + $0xf8] sm:$0xff] %vm4148_vm12, %v722_v62  ;;  %vm1077_vm12 = vcmask 678912   ;;  %v737_v62 = vld [vmem:[#allocation2] sm:$0xff] }
 0x16a   : > { %1266 = vrot.lane.b32.xlu1 %v2973_v22, %s2639_s11 }
 0x16b   : > { %1270 = vrot.lane.b32.xlu0 %v2900_v16, %s2639_s11  ;;  %1248 = vrot.lane.b32.xlu2 %v2900_v16, %s2638_s30  ;;  %s2651_s30 = smov 106  }
 0x16c   : > { %v1051_v6 = vpop.permute.xlu1 %1050 }
 0x16d   : > { %v3252_v63 = vpop.permute.xlu0 %1093  ;;  %v1158_v1 = vpop.permute.xlu2 %1157  ;;  %v3257_v7 = vsel %vm992_vm10, %v1049_v46, %v1051_v6 }
 0x16e   : > { %v1100_v2 = vsel %vm1099_vm2, %v1092_v42, %v3252_v63  ;;  %1174 = vst.msk [vmem:[#allocation3 + $0xa0] sm:$0xff] %vm1173_vm9, %v1158_v1  ;;  %vm1165_vm9 = vcmask 523264  }
 0x16f   : > { %1109 = vst [vmem:[#allocation3 + $0x48] sm:$0xff] %v1100_v2 }
 0x172   : > { %1272 = vrot.lane.b32.xlu1 %v3054_v28, %s2639_s11 }
 0x173   : > { %1289 = vrot.lane.b32.xlu0 %v2896_v15, %s2640_s12  ;;  %1268 = vrot.lane.b32.xlu2 %v2896_v15, %s2639_s11 }
 0x174   : > { %v1070_v13 = vpop.permute.xlu1 %1069 }
 0x175   : > { %v1114_v11 = vpop.permute.xlu0 %1113  ;;  %v865_v12 = vpop.permute.xlu2 %864  ;;  %v3265_v14 = vsel %vm1077_vm12, %v1070_v13, %v3216_v36  ;;  %1086 = vst.msk [vmem:[#allocation3 + $0x20] sm:$0xff] %vm1085_vm1, %v1070_v13  ;;  %vm872_vm1 = vcmask 875520  }
 0x176   : > { %1130 = vst.msk [vmem:[#allocation3 + $0x60] sm:$0xff] %vm1129_vm3, %v1114_v11  ;;  %v1652_v17 = vpack.c.bf16 %v3265_v14, %v3257_v7  ;;  %vm1121_vm3 = vcmask 662528  }
 0x17a   : > { %1291 = vrot.lane.b32.xlu1 %v2900_v16, %s2640_s12 }
 0x17b   : > { %1309 = vrot.lane.b32.xlu0 %v2973_v22, %s2621_s21  ;;  %1287 = vrot.lane.b32.xlu2 %v2973_v22, %s2640_s12 }
 0x17c   : > { %v1116_v20 = vpop.permute.xlu1 %1115 }
 0x17d   : > { %v3275_v18 = vpop.permute.xlu0 %1159  ;;  %v1053_v19 = vpop.permute.xlu2 %1052  ;;  %v1122_v32 = vsel %vm1121_vm3, %v1114_v11, %v1116_v20 }
 0x17e   : > { %v1166_v3 = vsel %vm1165_vm9, %v1158_v1, %v3275_v18  ;;  %v3280_v26 = vsel %vm992_vm10, %v1051_v6, %v1053_v19  ;;  %1131 = vst [vmem:[#allocation3 + $0x68] sm:$0xff] %v1122_v32  ;;  %v773_v1 = vpack.c.bf16 %v741_v61, %v737_v62  ;;  %v745_v32 = vld [vmem:[#allocation2 + $0x40] sm:$0xff] }
 0x17f   : > { %1175 = vst [vmem:[#allocation3 + $0xa8] sm:$0xff] %v1166_v3  ;;  %v749_v3 = vld [vmem:[#allocation2 + $0x60] sm:$0xff] }
 0x180   : > { %v777_v52 = vpack.c.bf16 %v749_v3, %v745_v32 }
 0x182   : > { %1311 = vrot.lane.b32.xlu1 %v2896_v15, %s2621_s21 }
 0x183   : > { %848 = vrot.lane.b32.xlu0 %v781_v38, %s2634_s17  ;;  %1293 = vrot.lane.b32.xlu2 %v3054_v28, %s2640_s12 }
 0x184   : > { %v1136_v42 = vpop.permute.xlu1 %1135 }
 0x185   : > { %v3288_v40 = vpop.permute.xlu0 %866  ;;  %v1098_v41 = vpop.permute.xlu2 %1097  ;;  %v1144_v55 = vsel %vm1143_vm4, %v1136_v42, %v3245_v47  ;;  %1152 = vst.msk [vmem:[#allocation3 + $0x80] sm:$0xff] %vm1151_vm13, %v1136_v42  ;;  %vm1111_vm13 = vcmask 801792  }
 0x186   : > { %v885_v51 = vsel %vm872_vm1, %v865_v12, %v3288_v40  ;;  %1153 = vst [vmem:[#allocation3 + $0x88] sm:$0xff] %v1144_v55  ;;  %v756_v55 = vld [vmem:[#allocation2 + $0x98] sm:$0xff] }
 0x187   : > { %v909_v46 = vsel %vm411_vm0, %v885_v51, 0  ;;  %v760_v51 = vld [vmem:[#allocation2 + $0xb8] sm:$0xff] }
 0x188   : > { %923 = vmatpush.bf16.msrb.mxu0 %v909_v46  ;;  %v784_v46 = vpack.c.bf16 %v760_v51, %v756_v55 }
 0x18a   : > { %832 = vrot.lane.b32.xlu1 %v773_v1, %s2634_s17  ;;  %v744_v1 = vld [vmem:[#allocation2 + $0x38] sm:$0xff] }
 0x18b   : > { %842 = vrot.lane.b32.xlu0 %v778_v53, %s2634_s17  ;;  %1313 = vrot.lane.b32.xlu2 %v2900_v16, %s2621_s21  ;;  %v785_v53 = vpack.c.bf16 %v765_v29, %v761_v37 }
 0x18c   : > { %v1076_v12 = vpop.permute.xlu1 %1075 }
 0x18d   : > { %v1055_v2 = vpop.permute.xlu0 %1054  ;;  %v1118_v6 = vpop.permute.xlu2 %1117 }
 0x18e   : > { %v1058_v11 = vsel %vm992_vm10, %v1053_v19, %v1055_v2  ;;  %v1123_v13 = vsel %vm1121_vm3, %v1116_v20, %v1118_v6  ;;  %vm1089_vm10 = vcmask 809984   ;;  %v740_v2 = vld [vmem:[#allocation2 + $0x18] sm:$0xff] }
 0x18f   : > { %1068 = vst.msk [vmem:[#allocation3 + $0x18] sm:$0xff] %vm1067_vm15, %v1058_v11  ;;  %v776_v11 = vpack.c.bf16 %v744_v1, %v740_v2  ;;  %vm1155_vm15 = vcmask 785408  }
 0x190   : > { %1132 = vst [vmem:[#allocation3 + $0x70] sm:$0xff] %v1123_v13  ;;  %v768_v13 = vld [vmem:[#allocation2 + $0xf8] sm:$0xff] }
 0x191   : > { %v788_v27 = vpack.c.bf16 %v768_v13, %v764_v5 }
 0x192   : > { %856 = vrot.lane.b32.xlu1 %v785_v53, %s2634_s17 }
 0x193   : > { %836 = vrot.lane.b32.xlu0 %v775_v9, %s2634_s17  ;;  %840 = vrot.lane.b32.xlu2 %v777_v52, %s2634_s17 }
 0x194   : > { %v1096_v42 = vpop.permute.xlu1 %1095 }
 0x195   : > { %v1074_v19 = vpop.permute.xlu0 %1073  ;;  %v1164_v20 = vpop.permute.xlu2 %1163  ;;  %v1101_v56 = vsel %vm1099_vm2, %v3252_v63, %v1096_v42  ;;  %v1102_v4 = vsel %vm1099_vm2, %v1096_v42, %v1098_v41  ;;  %vm1133_vm2 = vcmask 793600  }
 0x196   : > { %v3312_v33 = vsel %vm1077_vm12, %v3216_v36, %v1074_v19  ;;  %v1080_v38 = vsel %vm1077_vm12, %v1074_v19, %v1076_v12  ;;  %1110 = vst [vmem:[#allocation3 + $0x50] sm:$0xff] %v1101_v56  ;;  %vm1186_vm12 = vcmask 515072  }
 0x197   : > { %v1653_v9 = vpack.c.bf16 %v3312_v33, %v3280_v26  ;;  %1090 = vst.msk [vmem:[#allocation3 + $0x38] sm:$0xff] %vm1089_vm10, %v1080_v38  ;;  %vm1238_vm10 = vcmask 1048040   ;;  %v1559_v26 = vld [vmem:[#allocation3 + $0x40] sm:$0xff] }
 0x198   : > { %1112 = vst.msk [vmem:[#allocation3 + $0x58] sm:$0xff] %vm1111_vm13, %v1102_v4  ;;  %vm1216_vm13 = vcmask 1048048  }
 0x19a   : > { %850 = vrot.lane.b32.xlu1 %v782_v59, %s2634_s17  ;;  %v748_v59 = vld [vmem:[#allocation2 + $0x58] sm:$0xff] }
 0x19b   : > { %854 = vrot.lane.b32.xlu0 %v784_v46, %s2634_s17  ;;  %834 = vrot.lane.b32.xlu2 %v774_v45, %s2634_s17  ;;  %v780_v0 = vpack.c.bf16 %v752_v43, %v748_v59 }
 0x19c   : > { %v1181_v61 = vpop.permute.xlu1 %1180 }
 0x19d   : > { %v1120_v36 = vpop.permute.xlu0 %1119  ;;  %v871_v63 = vpop.permute.xlu2 %870 }
 0x19e   : > { %v1124_v41 = vsel %vm1121_vm3, %v1118_v6, %v1120_v36  ;;  %v918_v62 = vsel %vm411_vm0, %v871_v63, 0  ;;  %vm1194_vm3 = vcmask 1048056  }
 0x19f   : > { %1134 = vst.msk [vmem:[#allocation3 + $0x78] sm:$0xff] %vm1133_vm2, %v1124_v41  ;;  %965 = vmatpush.bf16.msrb.mxu3 %v918_v62  ;;  %vm1230_vm2 = vcmask 498688  }
 0x1a2   : > { %838 = vrot.lane.b32.xlu1 %v776_v11, %s2634_s17 }
 0x1a3   : > { %860 = vrot.lane.b32.xlu0 %v787_v57, %s2634_s17  ;;  %858 = vrot.lane.b32.xlu2 %v786_v10, %s2634_s17 }
 0x1a4   : > { %v1142_v48 = vpop.permute.xlu1 %1141 }
 0x1a5   : > { %v1140_v39 = vpop.permute.xlu0 %1139  ;;  %v1183_v44 = vpop.permute.xlu2 %1182 }
 0x1a6   : > { %v3342_v45 = vsel %vm1143_vm4, %v3245_v47, %v1140_v39  ;;  %v1188_v58 = vsel %vm1186_vm12, %v1181_v61, %v1183_v44  ;;  %v1146_v25 = vsel %vm1143_vm4, %v1140_v39, %v1142_v48 }
 0x1a7   : > { %1156 = vst.msk [vmem:[#allocation3 + $0x98] sm:$0xff] %vm1155_vm15, %v1146_v25  ;;  %vm1260_vm15 = vcmask 1048032  }
 0x1a8   : > { %1197 = vst [vmem:[#allocation3 + $0xd0] sm:$0xff] %v1188_v58 }
 0x1aa   : > { %844 = vrot.lane.b32.xlu1 %v779_v31, %s2634_s17 }
 0x1ab   : > { %1315 = vrot.lane.b32.xlu0 %v3054_v28, %s2621_s21  ;;  %846 = vrot.lane.b32.xlu2 %v780_v0, %s2634_s17  ;;  %s2641_s21 = smov 24  }
 0x1ac   : > { %v1162_v47 = vpop.permute.xlu1 %1161 }
 0x1ad   : > { %v1179_v8 = vpop.permute.xlu0 %1178  ;;  %v1203_v10 = vpop.permute.xlu2 %1202  ;;  %v3356_v6 = vsel %vm1165_vm9, %v3275_v18, %v1162_v47  ;;  %v1168_v12 = vsel %vm1165_vm9, %v1162_v47, %v1164_v20  ;;  %vm1198_vm9 = vcmask 646144  }
 0x1ae   : > { %v1187_v57 = vsel %vm1186_vm12, %v1179_v8, %v1181_v61  ;;  %1195 = vst.msk [vmem:[#allocation3 + $0xc0] sm:$0xff] %vm1194_vm3, %v1179_v8  ;;  %v1661_v3 = vpack.c.bf16 %v3356_v6, %v3342_v45  ;;  %vm1242_vm3 = vcmask 629760  }
 0x1af   : > { %1196 = vst [vmem:[#allocation3 + $0xc8] sm:$0xff] %v1187_v57 }
 0x1b0   : > { %1177 = vst.msk [vmem:[#allocation3 + $0xb8] sm:$0xff] %vm1143_vm4, %v1168_v12  ;;  %vm1208_vm4 = vcmask 506880   ;;  %v2605_v12 = vld [vmem:[#allocation3 + $0x310] sm:$0xff] }
 0x1b2   : > { %862 = vrot.lane.b32.xlu1 %v788_v27, %s2634_s17 }
 0x1b3   : > { %1332 = vrot.lane.b32.xlu0 %v2900_v16, %s2622_s23  ;;  %852 = vrot.lane.b32.xlu2 %v783_v60, %s2634_s17 }
 0x1b4   : > { %v869_v32 = vpop.permute.xlu1 %868 }
 0x1b5   : > { %v1185_v31 = vpop.permute.xlu0 %1184  ;;  %v1223_v18 = vpop.permute.xlu2 %1222  ;;  %v886_v37 = vsel %vm872_vm1, %v3288_v40, %v869_v32  ;;  %v887_v52 = vsel %vm872_vm1, %v869_v32, %v871_v63  ;;  %v2606_v32 = vld [vmem:[#allocation3 + $0x308] sm:$0xff] }
 0x1b6   : > { %v1189_v29 = vsel %vm1186_vm12, %v1183_v44, %v1185_v31  ;;  %1239 = vst.msk [vmem:[#allocation3 + $0x100] sm:$0xff] %vm1238_vm10, %v1223_v18  ;;  %v912_v53 = vsel %vm411_vm0, %v886_v37, 0  ;;  %v915_v21 = vsel %vm411_vm0, %v887_v52, 0  ;;  %vm1220_vm12 = vcmask 637952  }
 0x1b7   : > { %1199 = vst.msk [vmem:[#allocation3 + $0xd8] sm:$0xff] %vm1198_vm9, %v1189_v29  ;;  %937 = vmatpush.bf16.msrb.mxu1 %v912_v53  ;;  %951 = vmatpush.bf16.msrb.mxu2 %v915_v21  ;;  %vm1252_vm10 = vcmask 490496   ;;  %vm1303_vm9 = vcmask 1047896  }
 0x1ba   : > { %1328 = vrot.lane.b32.xlu1 %v2973_v22, %s2622_s23 }
 0x1bb   : > { %1349 = vrot.lane.b32.xlu0 %v2896_v15, %s2620_s20  ;;  %1330 = vrot.lane.b32.xlu2 %v2896_v15, %s2622_s23 }
 0x1bc   : > { %v1201_v19 = vpop.permute.xlu1 %1200 }
 0x1bd   : > { %v1205_v54 = vpop.permute.xlu0 %1204  ;;  %v1229_v60 = vpop.permute.xlu2 %1228  ;;  %v3385_v20 = vsel %vm1208_vm4, %v1201_v19, %v1203_v10  ;;  %1217 = vst.msk [vmem:[#allocation3 + $0xe0] sm:$0xff] %vm1216_vm13, %v1201_v19  ;;  %vm1274_vm13 = vcmask 359424  }
 0x1be   : > { %v3382_v40 = vsel %vm1208_vm4, %v1203_v10, %v1205_v54 }
 0x1c2   : > { %1334 = vrot.lane.b32.xlu1 %v3054_v28, %s2622_s23  ;;  %s2642_s23 = smov 23  }
 0x1c3   : > { %1366 = vrot.lane.b32.xlu0 %v2973_v22, %s2641_s21  ;;  %1347 = vrot.lane.b32.xlu2 %v2973_v22, %s2620_s20 }
 0x1c4   : > { %v1207_v56 = vpop.permute.xlu1 %1206 }
 0x1c5   : > { %v1225_v38 = vpop.permute.xlu0 %1224  ;;  %v1249_v42 = vpop.permute.xlu2 %1248  ;;  %v1211_v4 = vsel %vm1208_vm4, %v1205_v54, %v1207_v56  ;;  %vm1264_vm4 = vcmask 621568  }
 0x1c6   : > { %v3393_v51 = vsel %vm1230_vm2, %v1223_v18, %v1225_v38  ;;  %1221 = vst.msk [vmem:[#allocation3 + $0xf8] sm:$0xff] %vm1220_vm12, %v1211_v4  ;;  %vm1295_vm12 = vcmask 351232  }
 0x1ca   : > { %1351 = vrot.lane.b32.xlu1 %v2900_v16, %s2620_s20 }
 0x1cb   : > { %1372 = vrot.lane.b32.xlu0 %v3054_v28, %s2641_s21  ;;  %1353 = vrot.lane.b32.xlu2 %v3054_v28, %s2620_s20  ;;  %s2643_s20 = smov 4  }
 0x1cc   : > { %v1227_v36 = vpop.permute.xlu1 %1226 }
 0x1cd   : > { %v1245_v55 = vpop.permute.xlu0 %1244  ;;  %v1269_v46 = vpop.permute.xlu2 %1268  ;;  %v3402_v63 = vsel %vm1230_vm2, %v1225_v38, %v1227_v36  ;;  %v1233_v41 = vsel %vm1230_vm2, %v1227_v36, %v1229_v60  ;;  %vm1282_vm2 = vcmask 1047904  }
 0x1ce   : > { %1261 = vst.msk [vmem:[#allocation3 + $0x120] sm:$0xff] %vm1260_vm15, %v1245_v55  ;;  %vm4161_vm15 = vcmask 1047888  }
 0x1cf   : > { %1243 = vst.msk [vmem:[#allocation3 + $0x118] sm:$0xff] %vm1242_vm3, %v1233_v41  ;;  %vm1307_vm3 = vcmask 482304  }
 0x1d2   : > { %1368 = vrot.lane.b32.xlu1 %v2896_v15, %s2641_s21 }
 0x1d3   : > { %1391 = vrot.lane.b32.xlu0 %v2900_v16, %s2642_s23  ;;  %1370 = vrot.lane.b32.xlu2 %v2900_v16, %s2641_s21 }
 0x1d4   : > { %v1247_v2 = vpop.permute.xlu1 %1246 }
 0x1d5   : > { %v1251_v61 = vpop.permute.xlu0 %1250  ;;  %v1288_v62 = vpop.permute.xlu2 %1287  ;;  %v3411_v11 = vsel %vm1252_vm10, %v1245_v55, %v1247_v2  ;;  %v3414_v39 = vsel %vm1252_vm10, %v1247_v2, %v1249_v42 }
 0x1d6   : > { %v1255_v1 = vsel %vm1252_vm10, %v1249_v42, %v1251_v61  ;;  %1304 = vst.msk [vmem:[#allocation3 + $0x160] sm:$0xff] %vm1303_vm9, %v1288_v62  ;;  %v1668_v16 = vpack.c.bf16 %v3411_v11, %v3393_v51  ;;  %v1669_v44 = vpack.c.bf16 %v3414_v39, %v3402_v63  ;;  %v1650_v11 = vld [vmem:[#allocation3 + $0x318] sm:$0xff] }
 0x1d7   : > { %1265 = vst.msk [vmem:[#allocation3 + $0x138] sm:$0xff] %vm1264_vm4, %v1255_v1  ;;  %vm904_vm4 = vcmask 588800  }
 0x1da   : > { %1387 = vrot.lane.b32.xlu1 %v2973_v22, %s2642_s23 }
 0x1db   : > { %1411 = vrot.lane.b32.xlu0 %v2896_v15, %s2623_s24  ;;  %1389 = vrot.lane.b32.xlu2 %v2896_v15, %s2642_s23 }
 0x1dc   : > { %v1267_v25 = vpop.permute.xlu1 %1266 }
 0x1dd   : > { %v1271_v48 = vpop.permute.xlu0 %1270  ;;  %v1294_v58 = vpop.permute.xlu2 %1293  ;;  %v3430_v43 = vsel %vm1274_vm13, %v1267_v25, %v1269_v46  ;;  %1283 = vst.msk [vmem:[#allocation3 + $0x140] sm:$0xff] %vm1282_vm2, %v1267_v25  ;;  %v3493_v25 = vld [vmem:[%s4122_s4] sm:$0xff]  ;;  %vm4165_vm2 = vcmask 1047872  }
 0x1de   : > { %v3427_v59 = vsel %vm1274_vm13, %v1269_v46, %v1271_v48 }
 0x1e2   : > { %1393 = vrot.lane.b32.xlu1 %v3054_v28, %s2642_s23 }
 0x1e3   : > { %1428 = vrot.lane.b32.xlu0 %v2973_v22, %s2626_s27  ;;  %1409 = vrot.lane.b32.xlu2 %v2973_v22, %s2623_s24 }
 0x1e4   : > { %v1273_v10 = vpop.permute.xlu1 %1272 }
 0x1e5   : > { %v1290_v15 = vpop.permute.xlu0 %1289  ;;  %v3438_v0 = vpop.permute.xlu2 %1313  ;;  %v1277_v57 = vsel %vm1274_vm13, %v1271_v48, %v1273_v10 }
 0x1e6   : > { %v3441_v8 = vsel %vm1295_vm12, %v1288_v62, %v1290_v15  ;;  %1286 = vst.msk [vmem:[#allocation3 + $0x158] sm:$0xff] %vm1252_vm10, %v1277_v57  ;;  %vm4162_vm10 = vcmask 343040  }
 0x1e7   : > { %v1672_v47 = vpack.c.bf16 %v3441_v8, %v3430_v43  ;;  %vm4163_vm9 = vmmov %vm4162_vm10 }
 0x1e8   : > { %vm4164_vm13 = vmmov %vm4163_vm9 }
 0x1ea   : > { %1413 = vrot.lane.b32.xlu1 %v2605_v12, %s2623_s24 }
 0x1eb   : > { %1434 = vrot.lane.b32.xlu0 %v3054_v28, %s2626_s27  ;;  %1415 = vrot.lane.b32.xlu2 %v3054_v28, %s2623_s24  ;;  %s2644_s24 = smov 3  }
 0x1ec   : > { %v1292_v27 = vpop.permute.xlu1 %1291 }
 0x1ed   : > { %v1310_v13 = vpop.permute.xlu0 %1309  ;;  %v841_v5 = vpop.permute.xlu2 %840  ;;  %v3454_v31 = vsel %vm1295_vm12, %v1290_v15, %v1292_v27  ;;  %v1298_v18 = vsel %vm1295_vm12, %v1292_v27, %v1294_v58  ;;  %v2607_v15 = vld [vmem:[#allocation3 + $0x300] sm:$0xff]  ;;  %vm4166_vm12 = vcmask 474112  }
 0x1ee   : > { %1324 = vst.msk [vmem:[#allocation3 + $0x180] sm:$0xff] %vm4161_vm15, %v1310_v13  ;;  %v1673_v29 = vpack.c.bf16 %v3454_v31, %v3427_v59  ;;  %vm4167_vm15 = vcmask 1047880   ;;  %v1702_v31 = vpack.c.bf16 %v1650_v11, %v1650_v11 }
 0x1ef   : > { %1308 = vst.msk [vmem:[#allocation3 + $0x178] sm:$0xff] %vm1307_vm3, %v1298_v18  ;;  %v1704_v18 = vld [vmem:[%s4125_s7] sm:$0xff]  ;;  %vm1382_vm3 = vcmask 1047744  }
 0x1f2   : > { %1430 = vrot.lane.b32.xlu1 %v2606_v32, %s2626_s27 }
 0x1f3   : > { %1451 = vrot.lane.b32.xlu0 %v2605_v12, %s2624_s25  ;;  %1432 = vrot.lane.b32.xlu2 %v2605_v12, %s2626_s27 }
 0x1f4   : > { %v1312_v53 = vpop.permute.xlu1 %1311 }
 0x1f5   : > { %v849_v37 = vpop.permute.xlu0 %848  ;;  %v835_v52 = vpop.permute.xlu2 %834  ;;  %v3463_v21 = vsel %vm4162_vm10, %v1310_v13, %v1312_v53  ;;  %v3467_v54 = vsel %vm4163_vm9, %v1312_v53, %v3438_v0  ;;  %vm4168_vm10 = vcmask 465920   ;;  %vm1374_vm9 = vcmask 195584  }
 0x1fa   : > { %1447 = vrot.lane.b32.xlu1 %v2973_v22, %s2624_s25 }
 0x1fb   : > { %1468 = vrot.lane.b32.xlu0 %v2606_v32, %s2643_s20  ;;  %1449 = vrot.lane.b32.xlu2 %v2606_v32, %s2624_s25 }
 0x1fc   : > { %v833_v38 = vpop.permute.xlu1 %832 }
 0x1fd   : > { %v843_v60 = vpop.permute.xlu0 %842  ;;  %v859_v19 = vpop.permute.xlu2 %858  ;;  %v873_v58 = vsel %vm872_vm1, %v833_v38, %v835_v52 }
 0x1fe   : > { %v876_v61 = vsel %vm872_vm1, %v841_v5, %v843_v60 }
 0x202   : > { %1453 = vrot.lane.b32.xlu1 %v3054_v28, %s2624_s25 }
 0x203   : > { %1487 = vrot.lane.b32.xlu0 %v2973_v22, %s2644_s24  ;;  %1466 = vrot.lane.b32.xlu2 %v2973_v22, %s2643_s20 }
 0x204   : > { %v857_v4 = vpop.permute.xlu1 %856 }
 0x205   : > { %v3476_v42 = vpop.permute.xlu0 %836  ;;  %v3478_v56 = vpop.permute.xlu2 %846  ;;  %v882_v55 = vsel %vm872_vm1, %v857_v4, %v859_v19 }
 0x206   : > { %924 = vmatpush.bf16.msrb.mxu0 %v882_v55 }
 0x20a   : > { %1470 = vrot.lane.b32.xlu1 %v2605_v12, %s2643_s20 }
 0x20b   : > { %1493 = vrot.lane.b32.xlu0 %v3054_v28, %s2644_s24  ;;  %1472 = vrot.lane.b32.xlu2 %v3054_v28, %s2643_s20 }
 0x20c   : > { %v851_v41 = vpop.permute.xlu1 %850 }
 0x20d   : > { %v855_v46 = vpop.permute.xlu0 %854  ;;  %v853_v36 = vpop.permute.xlu2 %852  ;;  %v879_v22 = vsel %vm872_vm1, %v849_v37, %v851_v41  ;;  %v2608_v37 = vld [vmem:[%s2730_s22] sm:$0xff] }
 0x20e   : > { %925 = vmatpush.bf16.msrb.mxu0 %v879_v22  ;;  %v880_v10 = vsel %vm872_vm1, %v851_v41, %v853_v36  ;;  %v2087_v53 = vunpack.c.l.bf16 %v2608_v37 }
 0x212   : > { %1489 = vrot.lane.b32.xlu1 %v2606_v32, %s2644_s24  ;;  %926 = vmatpush.bf16.msrb.mxu0 %v876_v61 }
 0x213   : > { %1513 = vrot.lane.b32.xlu0 %v2605_v12, %s2625_s26  ;;  %1491 = vrot.lane.b32.xlu2 %v2605_v12, %s2644_s24 }
 0x214   : > { %v3486_v2 = vpop.permute.xlu1 %838 }
 0x215   : > { %v861_v62 = vpop.permute.xlu0 %860  ;;  %v1331_v1 = vpop.permute.xlu2 %1330 }
 0x216   : > { %v883_v48 = vsel %vm872_vm1, %v859_v19, %v861_v62  ;;  %927 = vmatpush.bf16.msrb.mxu0 %v873_v58  ;;  %v1558_v58 = vld [vmem:[#allocation3 + $0x38] sm:$0xff] }
 0x217   : > { %938 = vmatpush.bf16.msrb.mxu1 %v883_v48 }
 0x219   : > { %2462 = vmatmul.msk.bf16.vlgmr.msrb.gmra.mxu0 %vm904_vm4, %v3493_v25 }
 0x21a   : > { %1509 = vrot.lane.b32.xlu1 %v2607_v15, %s2625_s26 }
 0x21b   : > { %1532 = vrot.lane.b32.xlu0 %v2605_v12, %s2627_s28  ;;  %1511 = vrot.lane.b32.xlu2 %v2606_v32, %s2625_s26 }
 0x21c   : > { %939 = vmatpush.bf16.msrb.mxu1 %v880_v10  ;;  %v845_v27 = vpop.permute.xlu1 %844  ;;  %v1555_v10 = vld [vmem:[#allocation3 + $0x20] sm:$0xff] }
 0x21d   : > { %v1316_v57 = vpop.permute.xlu0 %1315  ;;  %v1348_v13 = vpop.permute.xlu2 %1347  ;;  %v877_v12 = vsel %vm872_vm1, %v843_v60, %v845_v27 }
 0x21e   : > { %v1319_v5 = vsel %vm4164_vm13, %v3438_v0, %v1316_v57  ;;  %1362 = vst.msk [vmem:[#allocation3 + $0x1c0] sm:$0xff] %vm4165_vm2, %v1348_v13  ;;  %v874_v0 = vsel %vm872_vm1, %v835_v52, %v3476_v42  ;;  %v881_v52 = vsel %vm872_vm1, %v853_v36, %v855_v46  ;;  %v1551_v36 = vld [vmem:[#allocation3] sm:$0xff]  ;;  %vm4170_vm13 = vcmask 457728  }
 0x21f   : > { %1327 = vst.msk [vmem:[#allocation3 + $0x198] sm:$0xff] %vm4166_vm12, %v1319_v5  ;;  %vm1395_vm2 = vcmask 187392   ;;  %vm4171_vm12 = vcmask 179200  }
 0x220   : > { %940 = vmatpush.bf16.msrb.mxu1 %v877_v12 }
 0x222   : > { %1528 = vrot.lane.b32.xlu1 %v2607_v15, %s2627_s28 }
 0x223   : > { %1707 = vperm.xlu0 %2522, %v1704_v18   ;;  %1530 = vrot.lane.b32.xlu2 %v2606_v32, %s2627_s28  ;;  %v2094_v32 = vsel %vm2800_vm5, %v2087_v53, -1e+30  ;;  %v2088_v18 = vunpack.c.h.bf16 %v2608_v37 }
 0x224   : > { %941 = vmatpush.bf16.msrb.mxu1 %v874_v0  ;;  %v863_v4 = vpop.permute.xlu1 %862 }
 0x225   : > { %v1333_v19 = vpop.permute.xlu0 %1332  ;;  %v3514_v38 = vpop.permute.xlu2 %1353  ;;  %966 = vmatpush.bf16.msrb.mxu3 %v863_v4  ;;  %v884_v55 = vsel %vm872_vm1, %v861_v62, %v863_v4  ;;  %v2095_v14 = vsel %vm2804_vm6, %v2088_v18, -1e+30 }
 0x226   : > { %v3517_v60 = vsel %vm587_vm11, %v1331_v1, %v1333_v19  ;;  %952 = vmatpush.bf16.msrb.mxu2 %v884_v55  ;;  %v1563_v55 = vld [vmem:[#allocation3 + $0x60] sm:$0xff] }
 0x227   : > { %v1677_v41 = vpack.c.bf16 %v3517_v60, %v3467_v54  ;;  %2463 = vmatmul.msk.bf16.vlgmr.msrb.gmra.mxu1 %vm904_vm4, %v3493_v25 }
 0x229   : > { %967 = vmatpush.bf16.msrb.mxu3 %v855_v46  ;;  %v1554_v46 = vld [vmem:[#allocation3 + $0x18] sm:$0xff] }
 0x22a   : > { %1515 = vrot.lane.b32.xlu1 %v3054_v28, %s2625_s26  ;;  %953 = vmatpush.bf16.msrb.mxu2 %v881_v52  ;;  %v1654_v57 = vpack.c.bf16 %v1558_v58, %v1554_v46  ;;  %s2645_s26 = smov 86  }
 0x22b   : > { %2102 = vrot.lane.b32.xlu0 %v2094_v32, %s2626_s27  ;;  %1534 = vrot.lane.b32.xlu2 %v3054_v28, %s2627_s28  ;;  %v878_v28 = vsel %vm872_vm1, %v845_v27, %v3478_v56  ;;  %s2648_s28 = smov 108  }
 0x22c   : > { %v1329_v48 = vpop.permute.xlu1 %1328 }
 0x22d   : > { %v1350_v22 = vpop.permute.xlu0 %1349  ;;  %v1371_v61 = vpop.permute.xlu2 %1370  ;;  %v3536_v15 = vsel %vm587_vm11, %v1329_v48, %v1331_v1  ;;  %968 = vmatpush.bf16.msrb.mxu3 %v3478_v56  ;;  %1343 = vst.msk [vmem:[#allocation3 + $0x1a0] sm:$0xff] %vm4167_vm15, %v1329_v48  ;;  %v875_v56 = vsel %vm872_vm1, %v3476_v42, %v3486_v2  ;;  %v2609_v1 = vld [vmem:[%s2730_s22 + $0x8] sm:$0xff]  ;;  %vm1407_vm15 = vcmask 318464   ;;  %s2646_s22 = smov 126  }
 0x22e   : > { %v3533_v62 = vsel %vm609_vm14, %v1348_v13, %v1350_v22  ;;  %954 = vmatpush.bf16.msrb.mxu2 %v878_v28  ;;  %v1651_v13 = vpack.c.bf16 %v1555_v10, %v1551_v36  ;;  %v2090_v5 = vunpack.c.h.bf16 %v2609_v1  ;;  %v1648_v10 = vld [vmem:[#allocation3 + $0x308] sm:$0xff]  ;;  %v1649_v28 = vld [vmem:[#allocation3 + $0x310] sm:$0xff] }
 0x22f   : > { %v1700_v36 = vpack.c.bf16 %v1648_v10, %v1648_v10 }
 0x230   : > { %v2097_v7 = vsel %vm2823_vm8, %v2090_v5, -1e+30 }
 0x231   : > { %969 = vmatpush.bf16.msrb.mxu3 %v3486_v2  ;;  %v2089_v2 = vunpack.c.l.bf16 %v2609_v1 }
 0x232   : > { %1768 = vrot.lane.b32.xlu1 %v1651_v13, %s2645_s26  ;;  %955 = vmatpush.bf16.msrb.mxu2 %v875_v56 }
 0x233   : > { %1774 = vrot.lane.b32.xlu0 %v1654_v57, %s2645_s26  ;;  %1770 = vrot.lane.b32.xlu2 %v1652_v17, %s2645_s26  ;;  %v2096_v33 = vsel %vm2819_vm7, %v2089_v2, -1e+30  ;;  %v1701_v57 = vpack.c.bf16 %v1649_v28, %v1649_v28 }
 0x234   : > { %v1335_v0 = vpop.permute.xlu1 %1334  ;;  %2465 = vmatmul.msk.bf16.vlgmr.msrb.gmra.mxu3 %vm904_vm4, %v3493_v25 }
 0x235   : > { %v1367_v27 = vpop.permute.xlu0 %1366  ;;  %v1390_v12 = vpop.permute.xlu2 %1389  ;;  %v1338_v53 = vsel %vm587_vm11, %v1333_v19, %v1335_v0  ;;  %2464 = vmatmul.msk.bf16.vlgmr.msrb.gmra.mxu2 %vm904_vm4, %v3493_v25  ;;  %vm4169_vm11 = vcmask 1047728  }
 0x236   : > { %1383 = vst.msk [vmem:[#allocation3 + $0x1e0] sm:$0xff] %vm1382_vm3, %v1367_v27  ;;  %vm4172_vm3 = vcmask 1047720  }
 0x237   : > { %1346 = vst.msk [vmem:[#allocation3 + $0x1b8] sm:$0xff] %vm4168_vm10, %v1338_v53  ;;  %vm1482_vm10 = vcmask 1047584  }
 0x23a   : > { %2104 = vrot.lane.b32.xlu1 %v2095_v14, %s2626_s27 }
 0x23b   : > { %2108 = vrot.lane.b32.xlu0 %v2097_v7, %s2626_s27  ;;  %1772 = vrot.lane.b32.xlu2 %v1653_v9, %s2645_s26  ;;  %v1655_v9 = vpack.c.bf16 %v1563_v55, %v1559_v26 }
 0x23c   : > { %v1352_v37 = vpop.permute.xlu1 %1351 }
 0x23d   : > { %v1373_v17 = vpop.permute.xlu0 %1372  ;;  %v1410_v42 = vpop.permute.xlu2 %1409  ;;  %v1356_v19 = vsel %vm609_vm14, %v1350_v22, %v1352_v37  ;;  %v1357_v4 = vsel %vm609_vm14, %v1352_v37, %v3514_v38 }
 0x23e   : > { %v1377_v25 = vsel %vm1374_vm9, %v1371_v61, %v1373_v17  ;;  %1424 = vst.msk [vmem:[#allocation3 + $0x220] sm:$0xff] %vm4169_vm11, %v1410_v42  ;;  %vm4174_vm11 = vcmask 302080  }
 0x23f   : > { %1386 = vst.msk [vmem:[#allocation3 + $0x1f8] sm:$0xff] %vm609_vm14, %v1377_v25  ;;  %vm1403_vm14 = vcmask 1047736  }
 0x240   : > { %1365 = vst.msk [vmem:[#allocation3 + $0x1d8] sm:$0xff] %vm4170_vm13, %v1357_v4  ;;  %vm4175_vm13 = vmmov %vm4171_vm12 }
 0x242   : > { %1776 = vrot.lane.b32.xlu1 %v1655_v9, %s2645_s26 }
 0x243   : > { %2106 = vrot.lane.b32.xlu2 %v2096_v33, %s2626_s27  ;;  %s2647_s27 = smov 127  }
 0x244   : > { %v1369_v48 = vpop.permute.xlu1 %1368 }
 0x245   : > { %v1392_v32 = vpop.permute.xlu0 %1391  ;;  %v1416_v52 = vpop.permute.xlu2 %1415  ;;  %v1375_v38 = vsel %vm1374_vm9, %v1367_v27, %v1369_v48  ;;  %v1376_v58 = vsel %vm1374_vm9, %v1369_v48, %v1371_v61  ;;  %vm4173_vm9 = vcmask 171008  }
 0x246   : > { %v3581_v22 = vsel %vm1395_vm2, %v1390_v12, %v1392_v32  ;;  %v1680_v46 = vpack.c.bf16 %v1375_v38, %v3533_v62  ;;  %v1681_v27 = vpack.c.bf16 %v1376_v58, %v1356_v19 }
 0x247   : > { %v1610_v8 = vld [vmem:[#allocation3 + $0x1d8] sm:$0xff] }
 0x248   : > { %1826 = vrot.lane.b32.xlu0 %v1680_v46, %s2645_s26 }
 0x24a   : > { %1866 = vrot.lane.b32.xlu1 %v1700_v36, %s2645_s26 }
 0x24b   : > { %1868 = vrot.lane.b32.xlu2 %v1701_v57, %s2645_s26 }
 0x24c   : > { %v1388_v5 = vpop.permute.xlu1 %1387 }
 0x24d   : > { %v1412_v13 = vpop.permute.xlu0 %1411  ;;  %v1433_v56 = vpop.permute.xlu2 %1432  ;;  %v3593_v61 = vsel %vm1395_vm2, %v1388_v5, %v1390_v12  ;;  %1404 = vst.msk [vmem:[#allocation3 + $0x200] sm:$0xff] %vm1403_vm14, %v1388_v5  ;;  %v1676_v12 = vpack.c.bf16 %v3536_v15, %v3463_v21  ;;  %vm4176_vm14 = vmmov %vm4171_vm12 }
 0x24e   : > { %v3590_v1 = vsel %vm4171_vm12, %v1410_v42, %v1412_v13  ;;  %vm4178_vm12 = vcmask 162816  }
 0x24f   : > { %v1684_v62 = vpack.c.bf16 %v3590_v1, %v3593_v61 }
 0x252   : > { %1828 = vrot.lane.b32.xlu1 %v1681_v27, %s2645_s26 }
 0x254   : > { %v1394_v53 = vpop.permute.xlu1 %1393 }
 0x255   : > { %v1429_v18 = vpop.permute.xlu0 %1428  ;;  %v1450_v0 = vpop.permute.xlu2 %1449  ;;  %v1398_v7 = vsel %vm1395_vm2, %v1392_v32, %v1394_v53  ;;  %vm4177_vm2 = vcmask 310272  }
 0x256   : > { %1443 = vst.msk [vmem:[#allocation3 + $0x240] sm:$0xff] %vm4172_vm3, %v1429_v18  ;;  %vm4180_vm3 = vmmov %vm4173_vm9 }
 0x257   : > { %1408 = vst.msk [vmem:[#allocation3 + $0x218] sm:$0xff] %vm1407_vm15, %v1398_v7  ;;  %vm4179_vm15 = vmmov %vm4173_vm9 }
 0x25a   : > { %1818 = vrot.lane.b32.xlu1 %v1676_v12, %s2645_s26 }
 0x25c   : > { %v1414_v2 = vpop.permute.xlu1 %1413 }
 0x25d   : > { %v1435_v14 = vpop.permute.xlu0 %1434  ;;  %v1467_v17 = vpop.permute.xlu2 %1466  ;;  %v3606_v25 = vsel %vm4175_vm13, %v1412_v13, %v1414_v2  ;;  %v1419_v37 = vsel %vm4176_vm14, %v1414_v2, %v1416_v52  ;;  %vm1503_vm13 = vcmask 1047576  }
 0x25e   : > { %v1438_v42 = vsel %vm4173_vm9, %v1433_v56, %v1435_v14  ;;  %1483 = vst.msk [vmem:[#allocation3 + $0x280] sm:$0xff] %vm1482_vm10, %v1467_v17  ;;  %v1685_v19 = vpack.c.bf16 %v3606_v25, %v3581_v22  ;;  %vm1474_vm10 = vcmask 31744   ;;  %vm4181_vm9 = vmmov %vm4178_vm12 }
 0x25f   : > { %1446 = vst.msk [vmem:[#allocation3 + $0x258] sm:$0xff] %vm4174_vm11, %v1438_v42  ;;  %vm4182_vm11 = vcmask 1047712   ;;  %vm4183_vm14 = vmmov %vm4181_vm9 }
 0x260   : > { %1427 = vst.msk [vmem:[#allocation3 + $0x238] sm:$0xff] %vm4177_vm2, %v1419_v37  ;;  %vm4184_vm2 = vcmask 293888  }
 0x264   : > { %v1431_v55 = vpop.permute.xlu1 %1430 }
 0x265   : > { %v1452_v21 = vpop.permute.xlu0 %1451  ;;  %v1473_v15 = vpop.permute.xlu2 %1472  ;;  %v1436_v26 = vsel %vm4179_vm15, %v1429_v18, %v1431_v55  ;;  %v3617_v33 = vsel %vm4180_vm3, %v1431_v55, %v1433_v56  ;;  %vm1507_vm15 = vcmask 154624   ;;  %vm4185_vm3 = vmmov %vm4181_vm9 }
 0x266   : > { %v3613_v4 = vsel %vm4178_vm12, %v1450_v0, %v1452_v21  ;;  %vm1495_vm12 = vcmask 23552  }
 0x267   : > { %v1689_v9 = vpack.c.bf16 %v3613_v4, %v3617_v33  ;;  %v1568_v33 = vld [vmem:[#allocation3 + $0x88] sm:$0xff] }
 0x26c   : > { %v1448_v38 = vpop.permute.xlu1 %1447 }
 0x26d   : > { %v1469_v32 = vpop.permute.xlu0 %1468  ;;  %v1492_v52 = vpop.permute.xlu2 %1491  ;;  %v1455_v58 = vsel %vm4181_vm9, %v1448_v38, %v1450_v0  ;;  %1462 = vst.msk [vmem:[#allocation3 + $0x260] sm:$0xff] %vm4182_vm11, %v1448_v38  ;;  %vm4186_vm9 = vcmask 15360   ;;  %vm4187_vm11 = vcmask 7168  }
 0x26e   : > { %v1475_v48 = vsel %vm1474_vm10, %v1467_v17, %v1469_v32 }
 0x274   : > { %v1454_v28 = vpop.permute.xlu1 %1453 }
 0x275   : > { %v1488_v10 = vpop.permute.xlu0 %1487  ;;  %v1512_v46 = vpop.permute.xlu2 %1511  ;;  %v1457_v36 = vsel %vm4183_vm14, %v1452_v21, %v1454_v28  ;;  %vm4190_vm14 = vcmask 138240   ;;  %v1688_v28 = vpack.c.bf16 %v1455_v58, %v1436_v26 }
 0x276   : > { %1504 = vst.msk [vmem:[#allocation3 + $0x2a0] sm:$0xff] %vm1503_vm13, %v1488_v10  ;;  %vm4188_vm13 = vmmov %vm4187_vm11 }
 0x277   : > { %1465 = vst.msk [vmem:[#allocation3 + $0x278] sm:$0xff] %vm4184_vm2, %v1457_v36  ;;  %vm4191_vm2 = vcmask 1047568  }
 0x27c   : > { %v1471_v56 = vpop.permute.xlu1 %1470 }
 0x27d   : > { %v1494_v57 = vpop.permute.xlu0 %1493  ;;  %v1531_v5 = vpop.permute.xlu2 %1530  ;;  %v1476_v27 = vsel %vm1474_vm10, %v1469_v32, %v1471_v56  ;;  %v1477_v18 = vsel %vm1474_vm10, %v1471_v56, %v1473_v15  ;;  %vm4189_vm10 = vmmov %vm4186_vm9 }
 0x27e   : > { %v1498_v13 = vsel %vm1495_vm12, %v1492_v52, %v1494_v57  ;;  %1486 = vst.msk [vmem:[#allocation3 + $0x298] sm:$0xff] %vm4185_vm3, %v1477_v18  ;;  %vm4193_vm3 = vcmask 1047560  }
 0x27f   : > { %1508 = vst.msk [vmem:[#allocation3 + $0x2b8] sm:$0xff] %vm1507_vm15, %v1498_v13  ;;  %vm4192_vm15 = vmmov %vm4187_vm11 }
 0x284   : > { %v1490_v7 = vpop.permute.xlu1 %1489 }
 0x285   : > { %v1514_v0 = vpop.permute.xlu0 %1513  ;;  %v1535_v12 = vpop.permute.xlu2 %1534  ;;  %v1496_v14 = vsel %vm1495_vm12, %v1488_v10, %v1490_v7  ;;  %v1497_v17 = vsel %vm1495_vm12, %v1490_v7, %v1492_v52  ;;  %vm1872_vm12 = vcmask 703488  }
 0x286   : > { %v1518_v53 = vsel %vm4186_vm9, %v1512_v46, %v1514_v0  ;;  %v1693_v42 = vpack.c.bf16 %v1497_v17, %v1476_v27  ;;  %vm4194_vm9 = vcmask 1047720  }
 0x288   : > { %1852 = vrot.lane.b32.xlu1 %v1693_v42, %s2645_s26 }
 0x28c   : > { %v1510_v55 = vpop.permute.xlu1 %1509 }
 0x28d   : > { %v1533_v2 = vpop.permute.xlu0 %1532  ;;  %v1771_v32 = vpop.permute.xlu2 %1770  ;;  %v1517_v15 = vsel %vm4189_vm10, %v1510_v55, %v1512_v46  ;;  %1524 = vst.msk [vmem:[#allocation3 + $0x2c0] sm:$0xff] %vm4191_vm2, %v1510_v55  ;;  %v1692_v46 = vpack.c.bf16 %v1496_v14, %v1475_v48  ;;  %v1577_v55 = vld [vmem:[#allocation3 + $0xd0] sm:$0xff] }
 0x28e   : > { %v1537_v37 = vsel %vm4187_vm11, %v1531_v5, %v1533_v2  ;;  %v1538_v21 = vsel %vm4188_vm13, %v1533_v2, %v1535_v12  ;;  %vm4195_vm11 = vmmov %vm4189_vm10  ;;  %vm4196_vm13 = vcmask 146432   ;;  %vm2092_vm10 = vcmask 474408  }
 0x28f   : > { %v1697_v38 = vpack.c.bf16 %v1537_v37, %v1518_v53  ;;  %1546 = vst.msk [vmem:[#allocation3 + $0x2f8] sm:$0xff] %vm4190_vm14, %v1538_v21  ;;  %vm4197_vm14 = vcmask 171008   ;;  %v1665_v1 = vpack.c.bf16 %v3382_v40, %v1577_v55  ;;  %v1561_v40 = vld [vmem:[#allocation3 + $0x50] sm:$0xff]  ;;  %v1635_v55 = vld [vmem:[#allocation3 + $0x2a0] sm:$0xff] }
 0x290   : > { %1842 = vrot.lane.b32.xlu1 %v1688_v28, %s2645_s26  ;;  %2093 = vst.msk [vmem:[#allocation4 + $0x18] sm:$0xff] %vm2092_vm10, %v2619_v24  ;;  %vm4198_vm2 = vmmov %vm4197_vm14  ;;  %v1565_v28 = vld [vmem:[#allocation3 + $0x70] sm:$0xff]  ;;  %vm2161_vm10 = vcmask 1031168  }
 0x291   : > { %1860 = vrot.lane.b32.xlu0 %v1697_v38, %s2645_s26  ;;  %v1572_v38 = vld [vmem:[#allocation3 + $0xa8] sm:$0xff] }
 0x292   : > { %v1660_v39 = vpack.c.bf16 %v1572_v38, %v1568_v33  ;;  %v1602_v33 = vld [vmem:[#allocation3 + $0x198] sm:$0xff] }
 0x294   : > { %v1529_v10 = vpop.permute.xlu1 %1528 }
 0x295   : > { %v3638_v52 = vpop.permute.xlu0 %1707  ;;  %v3640_v36 = vpop.permute.xlu2 %1772  ;;  %v1536_v57 = vsel %vm4192_vm15, %v1529_v10, %v1531_v5  ;;  %1543 = vst.msk [vmem:[#allocation3 + $0x2e0] sm:$0xff] %vm4193_vm3, %v1529_v10  ;;  %vm4199_vm15 = vmmov %vm4198_vm2  ;;  %vm4200_vm3 = vcmask 302080  }
 0x296   : > { %v3646_v26 = vsel %vm1872_vm12, %v1771_v32, %v3640_v36  ;;  %v929_v58 = vpop.f32.mrf.mxu0  ;;  %v1696_v13 = vpack.c.bf16 %v1536_v57, %v1517_v15  ;;  %v1646_v12 = vld [vmem:[#allocation3 + $0x2f8] sm:$0xff]  ;;  %v1657_v57 = vpack.c.bf16 %v1565_v28, %v1561_v40 }
 0x297   : > { %v930_v56 = vadd.f32 %v929_v58, %v2996_v23  ;;  %v1586_v40 = vld [vmem:[#allocation3 + $0x118] sm:$0xff] }
 0x298   : > { %1802 = vrot.lane.b32.xlu1 %v1668_v16, %s2645_s26  ;;  %1858 = vrot.lane.b32.xlu2 %v1696_v13, %s2645_s26 }
 0x299   : > { %1850 = vrot.lane.b32.xlu0 %v1692_v46, %s2645_s26  ;;  %v976_v5 = vmax.f32 %v930_v56, 0.0 }
 0x29b   : > { %984 = vst [vmem:[%s2811_s19 + $0x20] sm:$0xff] %v976_v5 }
 0x29c   : > { %v1516_v27 = vpop.permute.xlu1 %1515 }
 0x29d   : > { %v2103_v48 = vpop.permute.xlu0 %2102  ;;  %v1519_v18 = vsel %vm4195_vm11, %v1514_v0, %v1516_v27  ;;  %v2107_v54 = vpop.permute.xlu2 %2106  ;;  %v1647_v27 = vld [vmem:[#allocation3 + $0x300] sm:$0xff] }
 0x29e   : > { %2117 = vst.msk [vmem:[#allocation4] sm:$0xff] %vm4194_vm9, %v2103_v48  ;;  %v931_v53 = vpop.f32.mrf.mxu0  ;;  %vm4201_vm9 = vcmask 130048  }
 0x29f   : > { %1527 = vst.msk [vmem:[#allocation3 + $0x2d8] sm:$0xff] %vm4196_vm13, %v1519_v18  ;;  %v932_v7 = vadd.f32 %v931_v53, %v3072_v30  ;;  %v1603_v18 = vld [vmem:[#allocation3 + $0x1a0] sm:$0xff]  ;;  %vm4202_vm11 = vmmov %vm4201_vm9  ;;  %vm2141_vm13 = vcmask 1039360  }
 0x2a0   : > { %1836 = vrot.lane.b32.xlu1 %v1685_v19, %s2645_s26  ;;  %1820 = vrot.lane.b32.xlu2 %v1677_v41, %s2645_s26 }
 0x2a1   : > { %1812 = vrot.lane.b32.xlu0 %v1673_v29, %s2645_s26  ;;  %v980_v51 = vmax.f32 %v932_v7, 0.0 }
 0x2a3   : > { %988 = vst [vmem:[%s2811_s19 + $0x40] sm:$0xff] %v980_v51  ;;  %v1607_v51 = vld [vmem:[#allocation3 + $0x1c0] sm:$0xff] }
 0x2a4   : > { %v943_v16 = vpop.f32.mrf.mxu1  ;;  %v1769_v24 = vpop.permute.xlu1 %1768 }
 0x2a5   : > { %v3674_v0 = vpop.permute.xlu0 %1774  ;;  %v944_v59 = vadd.f32 %v943_v16, %v2996_v23  ;;  %v3678_v22 = vsel %vm1872_vm12, %v1769_v24, %v1771_v32 }
 0x2a6   : > { %v1642_v29 = vld [vmem:[#allocation3 + $0x2d8] sm:$0xff] }
 0x2a7   : > { %v977_v25 = vmax.f32 %v944_v59, 0.0  ;;  %v1698_v19 = vpack.c.bf16 %v1646_v12, %v1642_v29  ;;  %v1599_v59 = vld [vmem:[#allocation3 + $0x180] sm:$0xff]  ;;  %v1564_v29 = vld [vmem:[#allocation3 + $0x68] sm:$0xff]  ;;  %v1634_v12 = vld [vmem:[#allocation3 + $0x298] sm:$0xff] }
 0x2a8   : > { %1810 = vrot.lane.b32.xlu2 %v1672_v47, %s2645_s26  ;;  %v1614_v47 = vld [vmem:[#allocation3 + $0x1f8] sm:$0xff]  ;;  %v1675_v24 = vpack.c.bf16 %v1603_v18, %v1599_v59 }
 0x2a9   : > { %1870 = vrot.lane.b32.xlu0 %v1702_v31, %s2645_s26  ;;  %985 = vst [vmem:[%s2811_s19 + $0x28] sm:$0xff] %v977_v25  ;;  %1862 = vrot.lane.b32.xlu1 %v1698_v19, %s2645_s26  ;;  %v1682_v61 = vpack.c.bf16 %v1614_v47, %v1610_v8  ;;  %v3750_v31 = vld [vmem:[#allocation4] sm:$0xff]  ;;  %v1638_v25 = vld [vmem:[#allocation3 + $0x2b8] sm:$0xff]  ;;  %v1560_v19 = vld [vmem:[#allocation3 + $0x48] sm:$0xff] }
 0x2ac   : > { %v945_v60 = vpop.f32.mrf.mxu1  ;;  %v2105_v17 = vpop.permute.xlu1 %2104 }
 0x2ad   : > { %v2109_v41 = vpop.permute.xlu0 %2108  ;;  %v946_v14 = vadd.f32 %v945_v60, %v3072_v30  ;;  %v3690_v2 = vsel %vm4198_vm2, %v2103_v48, %v2105_v17  ;;  %v3693_v37 = vsel %vm4199_vm15, %v2105_v17, %v2107_v54  ;;  %v1611_v48 = vld [vmem:[#allocation3 + $0x1e0] sm:$0xff]  ;;  %v1656_v60 = vpack.c.bf16 %v1564_v29, %v1560_v19 }
 0x2ae   : > { %v2112_v42 = vsel %vm4197_vm14, %v2107_v54, %v2109_v41  ;;  %v1679_v16 = vpack.c.bf16 %v1611_v48, %v1607_v51  ;;  %v3754_v54 = vpack.i.bf16 %v3690_v2, %v3750_v31  ;;  %v1694_v41 = vpack.c.bf16 %v1638_v25, %v1634_v12  ;;  %v1591_v17 = vld [vmem:[#allocation3 + $0x140] sm:$0xff]  ;;  %v1594_v48 = vld [vmem:[#allocation3 + $0x158] sm:$0xff] }
 0x2af   : > { %2120 = vst.msk [vmem:[#allocation4 + $0x18] sm:$0xff] %vm4200_vm3, %v2112_v42  ;;  %v981_v43 = vmax.f32 %v946_v14, 0.0  ;;  %v1643_v14 = vld [vmem:[#allocation3 + $0x2e0] sm:$0xff]  ;;  %v1582_v25 = vld [vmem:[#allocation3 + $0xf8] sm:$0xff]  ;;  %vm2181_vm14 = vcmask 883712   ;;  %vm2221_vm2 = vcmask 867328  }
 0x2b0   : > { %1844 = vrot.lane.b32.xlu2 %v1689_v9, %s2645_s26  ;;  %v3720_v9 = vpop.permute.xlu2 %1868  ;;  %v1639_v42 = vld [vmem:[#allocation3 + $0x2c0] sm:$0xff]  ;;  %vm2261_vm15 = vcmask 711680  }
 0x2b1   : > { %1834 = vrot.lane.b32.xlu0 %v1684_v62, %s2645_s26  ;;  %989 = vst [vmem:[%s2811_s19 + $0x48] sm:$0xff] %v981_v43  ;;  %1788 = vrot.lane.b32.xlu1 %v1661_v3, %s2645_s26  ;;  %v1595_v43 = vld [vmem:[#allocation3 + $0x160] sm:$0xff]  ;;  %v1695_v8 = vpack.c.bf16 %v1643_v14, %v1639_v42 }
 0x2b2   : > { %v1671_v47 = vpack.c.bf16 %v1595_v43, %v1591_v17  ;;  %v1615_v19 = vld [vmem:[#allocation3 + $0x200] sm:$0xff] }
 0x2b3   : > { %v1619_v17 = vld [vmem:[#allocation3 + $0x220] sm:$0xff] }
 0x2b4   : > { %v3709_v21 = vpop.permute.xlu1 %1776  ;;  %v1683_v42 = vpack.c.bf16 %v1619_v17, %v1615_v19 }
 0x2b7   : > { %v971_v62 = vpop.f32.mrf.mxu3 }
 0x2b8   : > { %v972_v4 = vadd.f32 %v971_v62, %v2996_v23  ;;  %1804 = vrot.lane.b32.xlu2 %v1669_v44, %s2645_s26  ;;  %v957_v45 = vpop.f32.mrf.mxu2  ;;  %v1576_v44 = vld [vmem:[#allocation3 + $0xc8] sm:$0xff] }
 0x2b9   : > { %1796 = vrot.lane.b32.xlu0 %v1665_v1, %s2645_s26  ;;  %1830 = vrot.lane.b32.xlu1 %v1682_v61, %s2645_s26  ;;  %v958_v3 = vadd.f32 %v957_v45, %v2996_v23  ;;  %v1664_v10 = vpack.c.bf16 %v3385_v20, %v1576_v44  ;;  %v1630_v1 = vld [vmem:[#allocation3 + $0x278] sm:$0xff]  ;;  %v1631_v61 = vld [vmem:[#allocation3 + $0x280] sm:$0xff] }
 0x2ba   : > { %v979_v6 = vmax.f32 %v972_v4, 0.0  ;;  %v3739_v53 = vpop.permute.xlu0 %1826  ;;  %v1691_v62 = vpack.c.bf16 %v1635_v55, %v1631_v61  ;;  %v1626_v4 = vld [vmem:[#allocation3 + $0x258] sm:$0xff]  ;;  %v1623_v44 = vld [vmem:[#allocation3 + $0x240] sm:$0xff] }
 0x2bb   : > { %v978_v32 = vmax.f32 %v958_v3, 0.0  ;;  %v1690_v45 = vpack.c.bf16 %v1630_v1, %v1626_v4  ;;  %v1590_v3 = vld [vmem:[#allocation3 + $0x138] sm:$0xff]  ;;  %v1567_v61 = vld [vmem:[#allocation3 + $0x80] sm:$0xff] }
 0x2bc   : > { %987 = vst.msk [vmem:[%s2811_s19 + $0x38] sm:$0xff] %vm4201_vm9, %v979_v6  ;;  %v3724_v15 = vpop.permute.xlu1 %1866  ;;  %v1606_v6 = vld [vmem:[#allocation3 + $0x1b8] sm:$0xff]  ;;  %v1670_v38 = vpack.c.bf16 %v1590_v3, %v1586_v40  ;;  %v1575_v3 = vld [vmem:[#allocation3 + $0xc0] sm:$0xff] }
 0x2bd   : > { %v1910_v63 = vsel %vm1872_vm12, %v3724_v15, %v3720_v9  ;;  %986 = vst [vmem:[%s2811_s19 + $0x30] sm:$0xff] %v978_v32  ;;  %v1678_v32 = vpack.c.bf16 %v1606_v6, %v1602_v33  ;;  %v3817_v4 = vld [vmem:[#allocation4 + $0x18] sm:$0xff] }
 0x2be   : > { %v1967_v23 = vsel %vm411_vm0, %v1910_v63, 0  ;;  %v1627_v63 = vld [vmem:[#allocation3 + $0x260] sm:$0xff]  ;;  %v2590_v40 = vpack.i.bf16 %v3817_v4, %v3693_v37 }
 0x2bf   : > { %v973_v46 = vpop.f32.mrf.mxu3  ;;  %2017 = vmatpush.bf16.msra.mxu3 %v1967_v23  ;;  %v1687_v28 = vpack.c.bf16 %v1627_v63, %v1623_v44  ;;  %v1618_v23 = vld [vmem:[#allocation3 + $0x218] sm:$0xff] }
 0x2c0   : > { %v974_v58 = vadd.f32 %v973_v46, %v3072_v30  ;;  %1794 = vrot.lane.b32.xlu2 %v1664_v10, %s2645_s26  ;;  %v959_v13 = vpop.f32.mrf.mxu2 }
 0x2c1   : > { %1786 = vrot.lane.b32.xlu0 %v1660_v39, %s2645_s26  ;;  %1780 = vrot.lane.b32.xlu1 %v1657_v57, %s2645_s26  ;;  %v960_v5 = vadd.f32 %v959_v13, %v3072_v30  ;;  %v1699_v30 = vpack.c.bf16 %v1647_v27, %v1647_v27  ;;  %v1622_v39 = vld [vmem:[#allocation3 + $0x238] sm:$0xff] }
 0x2c2   : > { %v983_v56 = vmax.f32 %v974_v58, 0.0  ;;  %v1686_v10 = vpack.c.bf16 %v1622_v39, %v1618_v23  ;;  %v1587_v58 = vld [vmem:[#allocation3 + $0x120] sm:$0xff]  ;;  %v1598_v13 = vld [vmem:[#allocation3 + $0x178] sm:$0xff] }
 0x2c3   : > { %v982_v20 = vmax.f32 %v960_v5, 0.0  ;;  %v1674_v27 = vpack.c.bf16 %v1598_v13, %v1594_v48 }
 0x2c4   : > { %991 = vst.msk [vmem:[%s2811_s19 + $0x58] sm:$0xff] %vm4202_vm11, %v983_v56  ;;  %v3741_v7 = vpop.permute.xlu1 %1828  ;;  %v1583_v56 = vld [vmem:[#allocation3 + $0x100] sm:$0xff] }
 0x2c5   : > { %v1895_v11 = vsel %vm1872_vm12, %v3739_v53, %v3741_v7  ;;  %990 = vst [vmem:[%s2811_s19 + $0x50] sm:$0xff] %v982_v20  ;;  %v1667_v5 = vpack.c.bf16 %v1587_v58, %v1583_v56 }
 0x2c6   : > { %2001 = vmatpush.bf16.msra.mxu2 %v1895_v11  ;;  %v1574_v11 = vld [vmem:[#allocation3 + $0xb8] sm:$0xff] }
 0x2c8   : > { %1864 = vrot.lane.b32.xlu2 %v1699_v30, %s2645_s26 }
 0x2c9   : > { %1824 = vrot.lane.b32.xlu0 %v1679_v16, %s2645_s26  ;;  %1816 = vrot.lane.b32.xlu1 %v1675_v24, %s2645_s26  ;;  %v1570_v16 = vld [vmem:[#allocation3 + $0x98] sm:$0xff] }
 0x2ca   : > { %v1662_v59 = vpack.c.bf16 %v1574_v11, %v1570_v16 }
 0x2cc   : > { %v3776_v57 = vpop.permute.xlu1 %1818 }
 0x2d0   : > { %1854 = vrot.lane.b32.xlu2 %v1694_v41, %s2645_s26  ;;  %v1578_v41 = vld [vmem:[#allocation3 + $0xd8] sm:$0xff] }
 0x2d1   : > { %1778 = vrot.lane.b32.xlu0 %v1656_v60, %s2645_s26  ;;  %2531 = vrot.lane.b32.xlu1 %v3754_v54, %s2646_s22  ;;  %v1566_v60 = vld [vmem:[#allocation3 + $0x78] sm:$0xff]  ;;  %v1666_v14 = vpack.c.bf16 %v1582_v25, %v1578_v41 }
 0x2d8   : > { %1856 = vrot.lane.b32.xlu2 %v1695_v8, %s2645_s26 }
 0x2d9   : > { %2526 = vrot.lane.b32.xlu0 %v3754_v54, %s2647_s27  ;;  %1808 = vrot.lane.b32.xlu1 %v1671_v47, %s2645_s26 }
 0x2e0   : > { %1846 = vrot.lane.b32.xlu2 %v1690_v45, %s2645_s26  ;;  %v1571_v45 = vld [vmem:[#allocation3 + $0xa0] sm:$0xff] }
 0x2e1   : > { %1848 = vrot.lane.b32.xlu0 %v1691_v62, %s2645_s26  ;;  %2541 = vrot.lane.b32.xlu1 %v3754_v54, %s2634_s17  ;;  %v1579_v62 = vld [vmem:[#allocation3 + $0xe0] sm:$0xff]  ;;  %v1659_v6 = vpack.c.bf16 %v1571_v45, %v1567_v61 }
 0x2e2   : > { %v1663_v33 = vpack.c.bf16 %v1579_v62, %v1575_v3 }
 0x2e8   : > { %1822 = vrot.lane.b32.xlu2 %v1678_v32, %s2645_s26 }
 0x2e9   : > { %2536 = vrot.lane.b32.xlu0 %v3754_v54, %s2648_s28  ;;  %1806 = vrot.lane.b32.xlu1 %v1670_v38, %s2645_s26 }
 0x2f0   : > { %1838 = vrot.lane.b32.xlu2 %v1686_v10, %s2645_s26 }
 0x2f1   : > { %1840 = vrot.lane.b32.xlu0 %v1687_v28, %s2645_s26  ;;  %2556 = vrot.lane.b32.xlu1 %v3754_v54, %s2649_s14  ;;  %v2302_v28 = vld [vmem:[%s4127_s9] sm:$0xff] }
 0x2f2   : > { %v3778_v46 = vpop.permute.xlu2 %1858 }
 0x2f8   : > { %1814 = vrot.lane.b32.xlu2 %v1674_v27, %s2645_s26 }
 0x2f9   : > { %1800 = vrot.lane.b32.xlu0 %v1667_v5, %s2645_s26  ;;  %2561 = vrot.lane.b32.xlu1 %v3754_v54, %s2645_s26 }
 0x2fa   : > { %v3784_v18 = vpop.permute.xlu1 %1852  ;;  %v3786_v20 = vpop.permute.xlu2 %1820 }
 0x2fb   : > { %v1892_v51 = vsel %vm1872_vm12, %v3776_v57, %v3786_v20 }
 0x2fc   : > { %2002 = vmatpush.bf16.msra.mxu2 %v1892_v51 }
 0x300   : > { %2546 = vrot.lane.b32.xlu2 %v3754_v54, %s2651_s30 }
 0x301   : > { %2551 = vrot.lane.b32.xlu0 %v3754_v54, %s2650_s29  ;;  %1790 = vrot.lane.b32.xlu1 %v1662_v59, %s2645_s26  ;;  %v1562_v54 = vld [vmem:[#allocation3 + $0x58] sm:$0xff] }
 0x302   : > { %v3798_v24 = vpop.permute.xlu1 %1842  ;;  %v3800_v29 = vpop.permute.xlu2 %1810  ;;  %v1658_v43 = vpack.c.bf16 %v1566_v60, %v1562_v54 }
 0x303   : > { %v3796_v30 = vpop.permute.xlu0 %1860 }
 0x304   : > { %v1907_v12 = vsel %vm1872_vm12, %v3778_v46, %v3796_v30 }
 0x305   : > { %2018 = vmatpush.bf16.msra.mxu3 %v1907_v12 }
 0x308   : > { %1832 = vrot.lane.b32.xlu2 %v1683_v42, %s2645_s26 }
 0x309   : > { %1798 = vrot.lane.b32.xlu0 %v1666_v14, %s2645_s26  ;;  %1782 = vrot.lane.b32.xlu1 %v1658_v43, %s2645_s26 }
 0x30a   : > { %v3810_v47 = vpop.permute.xlu1 %1802  ;;  %v3812_v55 = vpop.permute.xlu2 %1844 }
 0x30b   : > { %v3808_v8 = vpop.permute.xlu0 %1850  ;;  %v1901_v32 = vsel %vm1872_vm12, %v3798_v24, %v3812_v55 }
 0x30c   : > { %v1904_v1 = vsel %vm1872_vm12, %v3808_v8, %v3784_v18 }
 0x30d   : > { %2019 = vmatpush.bf16.msra.mxu3 %v1904_v1 }
 0x310   : > { %1792 = vrot.lane.b32.xlu2 %v1663_v33, %s2645_s26 }
 0x311   : > { %1784 = vrot.lane.b32.xlu0 %v1659_v6, %s2645_s26  ;;  %2020 = vmatpush.bf16.msra.mxu3 %v1901_v32 }
 0x312   : > { %2591 = vrot.lane.b32.xlu1 %v2590_v40, %s2650_s29  ;;  %v3829_v63 = vpop.permute.xlu1 %1836  ;;  %v3831_v39 = vpop.permute.xlu2 %1804 }
 0x313   : > { %v3827_v38 = vpop.permute.xlu0 %1812  ;;  %v1886_v23 = vsel %vm1872_vm12, %v3810_v47, %v3831_v39 }
 0x314   : > { %v1889_v44 = vsel %vm1872_vm12, %v3800_v29, %v3827_v38 }
 0x315   : > { %2003 = vmatpush.bf16.msra.mxu2 %v1889_v44 }
 0x318   : > { %2566 = vrot.lane.b32.xlu2 %v2590_v40, %s2647_s27 }
 0x319   : > { %2576 = vrot.lane.b32.xlu0 %v2590_v40, %s2648_s28  ;;  %2004 = vmatpush.bf16.msra.mxu2 %v1886_v23 }
 0x31a   : > { %2305 = vperm.xlu1 %2523, %v2302_v28   ;;  %v3846_v13 = vpop.permute.xlu2 %1794 }
 0x31b   : > { %v1871_v10 = vpop.permute.xlu0 %1870  ;;  %v3844_v58 = vpop.permute.xlu1 %1862 }
 0x31c   : > { %v1911_v56 = vsel %vm1872_vm12, %v3720_v9, %v1871_v10  ;;  %v1908_v9 = vsel %vm1872_vm12, %v3796_v30, %v3844_v58  ;;  %v1703_v30 = vld [vmem:[%s4124_s6] sm:$0xff] }
 0x31d   : > { %v1970_v11 = vsel %vm411_vm0, %v1911_v56, 0  ;;  %v1712_v41 = vunpack.c.h.b16 %v1703_v30  ;;  %v1711_v32 = vunpack.c.l.b16 %v1703_v30  ;;  %v2125_v30 = vmax.f32 %v3750_v31, -1e+30 }
 0x31f   : > { %v3881_v14 = vpack.c.b16 %v1712_v41, %v1712_v41  ;;  %v3909_v44 = vpack.c.b16 %v1711_v32, %v1711_v32 }
 0x320   : > { %2571 = vrot.lane.b32.xlu2 %v2590_v40, %s2646_s22 }
 0x321   : > { %2586 = vrot.lane.b32.xlu0 %v2590_v40, %s2651_s30 }
 0x322   : > { %v1865_v27 = vpop.permute.xlu2 %1864 }
 0x323   : > { %v3852_v5 = vpop.permute.xlu0 %1834  ;;  %v3854_v48 = vpop.permute.xlu1 %1788  ;;  %v1909_v16 = vsel %vm1872_vm12, %v1865_v27, %v3724_v15 }
 0x324   : > { %v1898_v51 = vsel %vm1872_vm12, %v3852_v5, %v3829_v63  ;;  %v1964_v59 = vsel %vm411_vm0, %v1909_v16, 0 }
 0x325   : > { %2021 = vmatpush.bf16.msra.mxu3 %v1898_v51  ;;  %1991 = vmatpush.bf16.msra.mxu1 %v1964_v59 }
 0x328   : > { %2581 = vrot.lane.b32.xlu2 %v2590_v40, %s2634_s17  ;;  %2467 = vmatmul.msk.bf16.vlgmr.msra.gmra.mxu3 %vm904_vm4, %v3881_v14 }
 0x329   : > { %2043 = vmatpush.bf16.msrb.mxu3 %v1970_v11  ;;  %2601 = vrot.lane.b32.xlu0 %v2590_v40, %s2645_s26 }
 0x32a   : > { %v1855_v19 = vpop.permute.xlu2 %1854 }
 0x32b   : > { %v3868_v12 = vpop.permute.xlu0 %1796  ;;  %v3870_v25 = vpop.permute.xlu1 %1830  ;;  %v1905_v60 = vsel %vm1872_vm12, %v3784_v18, %v1855_v19 }
 0x32c   : > { %v1883_v15 = vsel %vm1872_vm12, %v3846_v13, %v3868_v12 }
 0x32d   : > { %2044 = vmatpush.bf16.msrb.mxu3 %v1908_v9  ;;  %2005 = vmatpush.bf16.msra.mxu2 %v1883_v15 }
 0x330   : > { %2596 = vrot.lane.b32.xlu2 %v2590_v40, %s2649_s14 }
 0x331   : > { %2045 = vmatpush.bf16.msrb.mxu3 %v1905_v60 }
 0x332   : > { %v1857_v42 = vpop.permute.xlu2 %1856 }
 0x333   : > { %v3883_v17 = vpop.permute.xlu0 %1786  ;;  %v3885_v54 = vpop.permute.xlu1 %1780  ;;  %v1906_v18 = vsel %vm1872_vm12, %v1857_v42, %v3778_v46 }
 0x334   : > { %v1880_v43 = vsel %vm1872_vm12, %v3883_v17, %v3854_v48  ;;  %1992 = vmatpush.bf16.msra.mxu1 %v1906_v18 }
 0x335   : > { %2006 = vmatpush.bf16.msra.mxu2 %v1880_v43 }
 0x33a   : > { %v1847_v45 = vpop.permute.xlu2 %1846 }
 0x33b   : > { %v1825_v1 = vpop.permute.xlu0 %1824  ;;  %v1817_v62 = vpop.permute.xlu1 %1816  ;;  %v1902_v6 = vsel %vm1872_vm12, %v3812_v55, %v1847_v45  ;;  %v1973_v55 = vsel %vm411_vm0, %v1871_v10, 0 }
 0x33c   : > { %v1894_v61 = vsel %vm1872_vm12, %v1825_v1, %v3739_v53  ;;  %2046 = vmatpush.bf16.msrb.mxu3 %v1902_v6  ;;  %v1891_v3 = vsel %vm1872_vm12, %v1817_v62, %v3776_v57 }
 0x33d   : > { %1975 = vmatpush.bf16.msra.mxu0 %v1894_v61 }
 0x341   : > { %1976 = vmatpush.bf16.msra.mxu0 %v1891_v3 }
 0x342   : > { %v3904_v40 = vpop.permute.xlu2 %1822 }
 0x343   : > { %v3900_v33 = vpop.permute.xlu0 %1778  ;;  %v3902_v46 = vpop.permute.xlu1 %2531 }
 0x344   : > { %v1877_v53 = vsel %vm1872_vm12, %v3900_v33, %v3885_v54  ;;  %v2534_v41 = vunpack.i.h.bf16 %v3902_v46  ;;  %v2533_v42 = vunpack.i.l.bf16 %v3902_v46 }
 0x345   : > { %2007 = vmatpush.bf16.msra.mxu2 %v1877_v53 }
 0x346   : > { %v2162_v31 = vsel %vm2161_vm10, %v2533_v42, %v2534_v41 }
 0x349   : > { %2008 = vmatpush.bf16.msra.mxu2 %v3646_v26 }
 0x34a   : > { %v1839_v23 = vpop.permute.xlu2 %1838 }
 0x34b   : > { %v3913_v57 = vpop.permute.xlu0 %2526  ;;  %v1809_v28 = vpop.permute.xlu1 %1808  ;;  %v1899_v27 = vsel %vm1872_vm12, %v3829_v63, %v1839_v23 }
 0x34c   : > { %2009 = vmatmul.bf16.vlgmr.msra.gmra.mxu2 %v3909_v44  ;;  %v1888_v56 = vsel %vm1872_vm12, %v1809_v28, %v3800_v29  ;;  %2047 = vmatpush.bf16.msrb.mxu3 %v1899_v27  ;;  %v2529_v16 = vunpack.i.h.bf16 %v3913_v57  ;;  %v2528_v59 = vunpack.i.l.bf16 %v3913_v57  ;;  %v1893_v28 = vsel %vm1872_vm12, %v3786_v20, %v3904_v40 }
 0x34d   : > { %2069 = vmatpush.bf16.msrb.mxu2 %v1973_v55  ;;  %1977 = vmatpush.bf16.msra.mxu0 %v1888_v56 }
 0x34f   : > { %2468 = vmatmul.msk.bf16.vlgmr.msrb.gmra.mxu3 %vm904_vm4, %v3881_v14 }
 0x351   : > { %2070 = vmatpush.bf16.msrb.mxu2 %v3844_v58 }
 0x352   : > { %v3925_v51 = vpop.permute.xlu2 %1814 }
 0x353   : > { %v1849_v26 = vpop.permute.xlu0 %1848  ;;  %v3923_v10 = vpop.permute.xlu1 %2541 }
 0x354   : > { %v1903_v11 = vsel %vm1872_vm12, %v1849_v26, %v3808_v8  ;;  %v2142_v8 = vsel %vm2141_vm13, %v2528_v59, %v2529_v16  ;;  %v2544_v3 = vunpack.i.h.bf16 %v3923_v10  ;;  %v1890_v26 = vsel %vm1872_vm12, %v3827_v38, %v3925_v51 }
 0x355   : > { %2071 = vmatpush.bf16.msrb.mxu2 %v1855_v19  ;;  %1993 = vmatpush.bf16.msra.mxu1 %v1903_v11  ;;  %v2149_v1 = vmax.f32 %v2125_v30, %v2142_v8 }
 0x359   : > { %2072 = vmatpush.bf16.msrb.mxu2 %v1847_v45  ;;  %v2169_v45 = vmax.f32 %v2149_v1, %v2162_v31 }
 0x35a   : > { %v3933_v58 = vpop.permute.xlu2 %2546 }
 0x35b   : > { %v3929_v29 = vpop.permute.xlu0 %2536  ;;  %v3931_v63 = vpop.permute.xlu1 %1806  ;;  %v2548_v56 = vunpack.i.l.bf16 %v3933_v58 }
 0x35c   : > { %v2539_v43 = vunpack.i.h.bf16 %v3929_v29  ;;  %v2538_v18 = vunpack.i.l.bf16 %v3929_v29  ;;  %v1887_v38 = vsel %vm1872_vm12, %v3831_v39, %v3931_v63 }
 0x35d   : > { %2073 = vmatpush.bf16.msrb.mxu2 %v1839_v23  ;;  %v2549_v23 = vunpack.i.h.bf16 %v3933_v58 }
 0x35e   : > { %v2182_v62 = vsel %vm2181_vm14, %v2538_v18, %v2539_v43 }
 0x35f   : > { %v2189_v32 = vmax.f32 %v2169_v45, %v2182_v62  ;;  %v2222_v20 = vsel %vm2221_vm2, %v2548_v56, %v2549_v23 }
 0x360   : > { %2469 = vmatmul.msk.bf16.vlgmr.msrb.gmra.mxu2 %vm904_vm4, %v3881_v14 }
 0x362   : > { %v1833_v15 = vpop.permute.xlu2 %1832 }
 0x363   : > { %v1841_v9 = vpop.permute.xlu0 %1840  ;;  %v3942_v19 = vpop.permute.xlu1 %2556  ;;  %v1897_v61 = vsel %vm1872_vm12, %v1833_v15, %v3852_v5  ;;  %v2543_v5 = vunpack.i.l.bf16 %v3923_v10 }
 0x364   : > { %v1900_v60 = vsel %vm1872_vm12, %v1841_v9, %v3798_v24  ;;  %v1896_v24 = vsel %vm1872_vm12, %v3741_v7, %v3870_v25  ;;  %v2559_v59 = vunpack.i.h.bf16 %v3942_v19  ;;  %v2558_v9 = vunpack.i.l.bf16 %v3942_v19 }
 0x365   : > { %1994 = vmatpush.bf16.msra.mxu1 %v1900_v60 }
 0x369   : > { %1995 = vmatpush.bf16.msra.mxu1 %v1897_v61 }
 0x36a   : > { %v1793_v53 = vpop.permute.xlu2 %1792 }
 0x36b   : > { %v1801_v6 = vpop.permute.xlu0 %1800  ;;  %v3968_v55 = vpop.permute.xlu1 %2561 }
 0x36c   : > { %v1885_v7 = vsel %vm1872_vm12, %v1801_v6, %v3810_v47  ;;  %2466 = vmatmul.msk.bf16.vlgmr.msra.gmra.mxu1 %vm904_vm4, %v3881_v14  ;;  %v2202_v47 = vsel %vm872_vm1, %v2543_v5, %v2544_v3  ;;  %v1882_v14 = vsel %vm1872_vm12, %v1793_v53, %v3846_v13  ;;  %vm2241_vm4 = vcmask 719872  }
 0x36d   : > { %2027 = vmatpush.bf16.msrb.mxu1 %v1896_v24  ;;  %1978 = vmatpush.bf16.msra.mxu0 %v1885_v7  ;;  %v2209_v27 = vmax.f32 %v2189_v32, %v2202_v47  ;;  %v2564_v60 = vunpack.i.h.bf16 %v3968_v55  ;;  %v2563_v30 = vunpack.i.l.bf16 %v3968_v55  ;;  %v2262_v24 = vsel %vm2261_vm15, %v2558_v9, %v2559_v59 }
 0x36e   : > { %v1876_v9 = vsel %vm1872_vm12, %v3709_v21, %v3900_v33 }
 0x36f   : > { %v2229_v15 = vmax.f32 %v2209_v27, %v2222_v20  ;;  %v2282_v39 = vsel %vm1872_vm12, %v2563_v30, %v2564_v60  ;;  %v2126_v30 = vmax.f32 %v3690_v2, -1e+30 }
 0x371   : > { %2028 = vmatpush.bf16.msrb.mxu1 %v1893_v28  ;;  %1979 = vmatpush.bf16.msra.mxu0 %v1882_v14 }
 0x372   : > { %v2567_v18 = vpop.permute.xlu2 %2566 }
 0x373   : > { %v3986_v11 = vpop.permute.xlu0 %2551  ;;  %v4000_v61 = vpop.permute.xlu1 %1790  ;;  %v2569_v14 = vunpack.i.h.bf16 %v2567_v18  ;;  %v2568_v27 = vunpack.i.l.bf16 %v2567_v18 }
 0x374   : > { %v2554_v13 = vunpack.i.h.bf16 %v3986_v11  ;;  %v2553_v8 = vunpack.i.l.bf16 %v3986_v11  ;;  %v1881_v32 = vsel %vm1872_vm12, %v3854_v48, %v4000_v61 }
 0x375   : > { %2029 = vmatpush.bf16.msrb.mxu1 %v1890_v26 }
 0x376   : > { %v2242_v42 = vsel %vm2241_vm4, %v2553_v8, %v2554_v13  ;;  %v1875_v8 = vsel %vm1872_vm12, %v3640_v36, %v3674_v0 }
 0x377   : > { %v2249_v1 = vmax.f32 %v2229_v15, %v2242_v42  ;;  %v2144_v15 = vsel %vm2141_vm13, %v2568_v27, %v2569_v14  ;;  %v2127_v42 = vmax.f32 %v3693_v37, -1e+30 }
 0x379   : > { %2030 = vmatpush.bf16.msrb.mxu1 %v1887_v38  ;;  %v2269_v31 = vmax.f32 %v2249_v1, %v2262_v24 }
 0x37a   : > { %v2572_v7 = vpop.permute.xlu2 %2571 }
 0x37b   : > { %v4008_v62 = vpop.permute.xlu0 %1798  ;;  %v2289_v45 = vmax.f32 %v2269_v31, %v2282_v39  ;;  %v4019_v56 = vpop.permute.xlu1 %1782  ;;  %v2574_v26 = vunpack.i.h.bf16 %v2572_v7  ;;  %v2573_v20 = vunpack.i.l.bf16 %v2572_v7 }
 0x37c   : > { %v1884_v6 = vsel %vm1872_vm12, %v3868_v12, %v4008_v62  ;;  %v4024_v12 = vld [vmem:[%s4126_s8] sm:$0xf]  ;;  %v1878_v48 = vsel %vm1872_vm12, %v3885_v54, %v4019_v56  ;;  %v2143_v54 = vsel %vm2141_vm13, %v2529_v16, %v2568_v27  ;;  %v2151_v16 = vmax.f32 %v2127_v42, %v2144_v15 }
 0x37d   : > { %2031 = vmatpush.bf16.msrb.mxu1 %v1884_v6  ;;  %v2293_v5 = vsel %vm2800_vm5, %v2289_v45, 0.0  ;;  %vm4203_vm5 = vcmask 64512   ;;  %v2163_v36 = vsel %vm2161_vm10, %v2534_v41, %v2573_v20  ;;  %v2150_v57 = vmax.f32 %v2126_v30, %v2143_v54 }
 0x37e   : > { %v2297_v53 = vpack.c.bf16 %v2293_v5, %v2293_v5 }
 0x37f   : > { %v2170_v46 = vmax.f32 %v2150_v57, %v2163_v36 }
 0x380   : > { %v2312_v28 = vsel %vm411_vm0, %v2297_v53, 0 }
 0x381   : > { %2032 = vmatpush.bf16.msrb.mxu1 %v1881_v32  ;;  %2330 = vmatpush.bf16.msra.mxu3 %v2312_v28 }
 0x382   : > { %v2582_v38 = vpop.permute.xlu2 %2581 }
 0x383   : > { %v1785_v47 = vpop.permute.xlu0 %1784  ;;  %v2583_v31 = vunpack.i.l.bf16 %v2582_v38  ;;  %v2584_v45 = vunpack.i.h.bf16 %v2582_v38 }
 0x384   : > { %2470 = vmatmul.msk.bf16.vlgmr.msra.gmra.mxu3 %vm4203_vm5, %v4024_v12  ;;  %v1879_v34 = vsel %vm1872_vm12, %v1785_v47, %v3883_v17  ;;  %v2128_v17 = vmax.f32 %v3817_v4, -1e+30  ;;  %v2164_v4 = vsel %vm2161_vm10, %v2573_v20, %v2574_v26  ;;  %v2592_v39 = vpop.permute.xlu1 %2591 }
 0x385   : > { %1980 = vmatpush.bf16.msra.mxu0 %v1879_v34  ;;  %2033 = vmatpush.bf16.msrb.mxu1 %v1878_v48  ;;  %v2171_v41 = vmax.f32 %v2151_v16, %v2164_v4  ;;  %v2593_v29 = vunpack.i.l.bf16 %v2592_v39 }
 0x386   : > { %v2152_v21 = vmax.f32 %v2128_v17, %v2569_v14 }
 0x388   : > { %v2172_v24 = vmax.f32 %v2152_v21, %v2574_v26 }
 0x389   : > { %1981 = vmatpush.bf16.msra.mxu0 %v1876_v9  ;;  %2034 = vmatpush.bf16.msrb.mxu1 %v1875_v8  ;;  %v2243_v9 = vsel %vm2241_vm4, %v2554_v13, %v2593_v29 }
 0x38a   : > { %v2597_v32 = vpop.permute.xlu2 %2596 }
 0x38b   : > { %v2577_v33 = vpop.permute.xlu0 %2576  ;;  %v2598_v10 = vunpack.i.l.bf16 %v2597_v32  ;;  %v2599_v17 = vunpack.i.h.bf16 %v2597_v32 }
 0x38c   : > { %v2579_v18 = vunpack.i.h.bf16 %v2577_v33  ;;  %v2578_v1 = vunpack.i.l.bf16 %v2577_v33  ;;  %2035 = vmatmul.bf16.vlgmr.msrb.gmra.mxu1 %v3909_v44 }
 0x38d   : > { %1982 = vmatpush.bf16.msra.mxu0 %v3678_v22  ;;  %v2594_v22 = vunpack.i.h.bf16 %v2592_v39  ;;  %v2264_v38 = vsel %vm2261_vm15, %v2598_v10, %v2599_v17 }
 0x38e   : > { %v2183_v2 = vsel %vm2181_vm14, %v2539_v43, %v2578_v1  ;;  %v2184_v37 = vsel %vm2181_vm14, %v2578_v1, %v2579_v18  ;;  %v2192_v6 = vmax.f32 %v2172_v24, %v2579_v18  ;;  %v2203_v43 = vsel %vm872_vm1, %v2544_v3, %v2583_v31 }
 0x38f   : > { %v2190_v5 = vmax.f32 %v2170_v46, %v2183_v2  ;;  %v2191_v53 = vmax.f32 %v2171_v41, %v2184_v37  ;;  %v2244_v8 = vsel %vm2241_vm4, %v2593_v29, %v2594_v22 }
 0x390   : > { %1983 = vmatmul.bf16.vlgmr.msra.gmra.mxu0 %v3909_v44  ;;  %v2212_v34 = vmax.f32 %v2192_v6, %v2584_v45 }
 0x391   : > { %2053 = vmatpush.bf16.msrb.mxu0 %v3870_v25  ;;  %v2204_v25 = vsel %vm872_vm1, %v2583_v31, %v2584_v45  ;;  %v2210_v48 = vmax.f32 %v2190_v5, %v2203_v43 }
 0x392   : > { %v2211_v14 = vmax.f32 %v2191_v53, %v2204_v25 }
 0x393   : > { %v2587_v7 = vpop.permute.xlu0 %2586 }
 0x394   : > { %v2589_v28 = vunpack.i.h.bf16 %v2587_v7  ;;  %v2588_v47 = vunpack.i.l.bf16 %v2587_v7 }
 0x395   : > { %2054 = vmatpush.bf16.msrb.mxu0 %v3904_v40 }
 0x396   : > { %v2223_v27 = vsel %vm2221_vm2, %v2549_v23, %v2588_v47  ;;  %v2224_v40 = vsel %vm2221_vm2, %v2588_v47, %v2589_v28  ;;  %v2232_v26 = vmax.f32 %v2212_v34, %v2589_v28  ;;  %v2263_v23 = vsel %vm2261_vm15, %v2559_v59, %v2598_v10 }
 0x397   : > { %v2230_v3 = vmax.f32 %v2210_v48, %v2223_v27  ;;  %v2231_v20 = vmax.f32 %v2211_v14, %v2224_v40 }
 0x398   : > { %v2252_v54 = vmax.f32 %v2232_v26, %v2594_v22 }
 0x399   : > { %2055 = vmatpush.bf16.msrb.mxu0 %v3925_v51  ;;  %v2250_v15 = vmax.f32 %v2230_v3, %v2243_v9  ;;  %v2251_v58 = vmax.f32 %v2231_v20, %v2244_v8 }
 0x39a   : > { %v2272_v11 = vmax.f32 %v2252_v54, %v2599_v17 }
 0x39b   : > { %v2602_v51 = vpop.permute.xlu0 %2601  ;;  %v2270_v21 = vmax.f32 %v2250_v15, %v2263_v23  ;;  %v2271_v13 = vmax.f32 %v2251_v58, %v2264_v38 }
 0x39c   : > { %v2604_v30 = vunpack.i.h.bf16 %v2602_v51  ;;  %v2603_v42 = vunpack.i.l.bf16 %v2602_v51 }
 0x39d   : > { %2056 = vmatpush.bf16.msrb.mxu0 %v3931_v63 }
 0x39e   : > { %v2283_v33 = vsel %vm1872_vm12, %v2564_v60, %v2603_v42  ;;  %v2284_v36 = vsel %vm1872_vm12, %v2603_v42, %v2604_v30  ;;  %v2292_v4 = vmax.f32 %v2272_v11, %v2604_v30 }
 0x39f   : > { %v2290_v63 = vmax.f32 %v2270_v21, %v2283_v33  ;;  %v2291_v19 = vmax.f32 %v2271_v13, %v2284_v36 }
 0x3a0   : > { %v2296_v59 = vsel %vm2823_vm8, %v2292_v4, 0.0  ;;  %vm4206_vm8 = vmmov %vm4203_vm5 }
 0x3a1   : > { %2057 = vmatpush.bf16.msrb.mxu0 %v4008_v62  ;;  %v2300_v18 = vpack.c.bf16 %v2296_v59, %v2296_v59  ;;  %v2294_v1 = vsel %vm2804_vm6, %v2290_v63, 0.0  ;;  %v2295_v57 = vsel %vm2819_vm7, %v2291_v19, 0.0  ;;  %vm4204_vm6 = vmmov %vm4203_vm5 }
 0x3a2   : > { %v2298_v55 = vpack.c.bf16 %v2294_v1, %v2294_v1  ;;  %v2299_v60 = vpack.c.bf16 %v2295_v57, %v2295_v57  ;;  %vm4205_vm7 = vmmov %vm4203_vm5 }
 0x3a3   : > { %v2321_v16 = vsel %vm411_vm0, %v2300_v18, 0 }
 0x3a4   : > { %2369 = vmatpush.bf16.msrb.mxu3 %v2321_v16  ;;  %v2315_v62 = vsel %vm411_vm0, %v2298_v55, 0  ;;  %v2318_v24 = vsel %vm411_vm0, %v2299_v60, 0  ;;  %vm4207_vm0 = vmmov %vm4201_vm9 }
 0x3a5   : > { %2058 = vmatpush.bf16.msrb.mxu0 %v4000_v61  ;;  %2343 = vmatpush.bf16.msra.mxu1 %v2315_v62  ;;  %vm4208_vm1 = vmmov %vm4207_vm0 }
 0x3a6   : > { %2356 = vmatpush.bf16.msra.mxu2 %v2318_v24 }
 0x3a7   : > { %2473 = vmatmul.msk.bf16.vlgmr.msrb.gmra.mxu3 %vm4204_vm6, %v4024_v12 }
 0x3a8   : > { %2471 = vmatmul.msk.bf16.vlgmr.msra.gmra.mxu1 %vm4205_vm7, %v4024_v12 }
 0x3a9   : > { %2059 = vmatpush.bf16.msrb.mxu0 %v4019_v56  ;;  %2472 = vmatmul.msk.bf16.vlgmr.msra.gmra.mxu2 %vm4206_vm8, %v4024_v12 }
 0x3ab   : > { %v2023_v35 = vpop.f32.mrf.mxu3 }
 0x3ad   : > { %2060 = vmatpush.bf16.msrb.mxu0 %v3674_v0  ;;  %v2306_v0 = vpop.permute.xlu1 %2305 }
 0x3b0   : > { %2061 = vmatmul.bf16.vlgmr.msrb.gmra.mxu0 %v3909_v44 }
 0x3b3   : > { %v2025_v49 = vpop.f32.mrf.mxu3 }
 0x3cf   : > { %v2010_v50 = vpop.f32.mrf.mxu2 }
 0x3d0   : > { %v2011_v61 = vadd.f32 %v2010_v50, %v3638_v52 }
 0x3d2   : > { %v2024_v2 = vadd.f32 %v2023_v35, %v2011_v61  ;;  %v2049_v37 = vpop.f32.mrf.mxu3 }
 0x3d4   : > { %v2080_v56 = vmax.f32 %v2024_v2, 0.0 }
 0x3d6   : > { %2084 = vst [vmem:[%s2811_s19 + $0x68] sm:$0xff] %v2080_v56 }
 0x3d7   : > { %v2012_v46 = vpop.f32.mrf.mxu2 }
 0x3da   : > { %v2051_v41 = vpop.f32.mrf.mxu3 }
 0x3e3   : > { %v2075_v12 = vpop.f32.mrf.mxu2 }
 0x3e9   : > { %v1997_v31 = vpop.f32.mrf.mxu1 }
 0x3eb   : > { %v2077_v45 = vpop.f32.mrf.mxu2 }
 0x3f1   : > { %v1999_v39 = vpop.f32.mrf.mxu1 }
 0x407   : > { %v2332_v44 = vpop.f32.mrf.mxu3 }
 0x408   : > { %v2333_v6 = vadd.f32 %v2332_v44, %v2306_v0 }
 0x409   : > { %v2036_v5 = vpop.f32.mrf.mxu1 }
 0x40a   : > { %v2375_v53 = vmax.f32 %v2333_v6, 0.0  ;;  %v2037_v22 = vadd.f32 %v2036_v5, %v3638_v52 }
 0x40c   : > { %2379 = vst [vmem:[%s2811_s19 + $0x80] sm:$0xff] %v2375_v53  ;;  %v2050_v29 = vadd.f32 %v2049_v37, %v2037_v22 }
 0x40d   : > { %v1984_v43 = vpop.f32.mrf.mxu0 }
 0x40e   : > { %v2081_v7 = vmax.f32 %v2050_v29, 0.0  ;;  %v1985_v25 = vadd.f32 %v1984_v43, %v3638_v52 }
 0x40f   : > { %v2334_v32 = vpop.f32.mrf.mxu3 }
 0x410   : > { %2085 = vst [vmem:[%s2811_s19 + $0x70] sm:$0xff] %v2081_v7  ;;  %v1998_v28 = vadd.f32 %v1997_v31, %v1985_v25 }
 0x411   : > { %v2038_v47 = vpop.f32.mrf.mxu1 }
 0x412   : > { %v2079_v34 = vmax.f32 %v1998_v28, 0.0 }
 0x414   : > { %2083 = vst [vmem:[%s2811_s19 + $0x60] sm:$0xff] %v2079_v34 }
 0x415   : > { %v1986_v48 = vpop.f32.mrf.mxu0 }
 0x425   : > { %v2345_v14 = vpop.f32.mrf.mxu1 }
 0x426   : > { %v2346_v27 = vadd.f32 %v2345_v14, %v2306_v0 }
 0x428   : > { %v2376_v40 = vmax.f32 %v2346_v27, 0.0 }
 0x42a   : > { %2380 = vst [vmem:[%s2811_s19 + $0x88] sm:$0xff] %v2376_v40  ;;  %v2371_v10 = vpop.f32.mrf.mxu3 }
 0x42b   : > { %v2372_v20 = vadd.f32 %v2371_v10, %v2306_v0 }
 0x42c   : > { %v2358_v9 = vpop.f32.mrf.mxu2 }
 0x42d   : > { %v2062_v26 = vpop.f32.mrf.mxu0  ;;  %v2359_v8 = vadd.f32 %v2358_v9, %v2306_v0  ;;  %v2378_v54 = vmax.f32 %v2372_v20, 0.0  ;;  %v2347_v15 = vpop.f32.mrf.mxu1 }
 0x42e   : > { %v2063_v3 = vadd.f32 %v2062_v26, %v3638_v52 }
 0x42f   : > { %v2377_v58 = vmax.f32 %v2359_v8, 0.0  ;;  %2382 = vst.msk [vmem:[%s2811_s19 + $0x98] sm:$0xff] %vm4207_vm0, %v2378_v54 }
 0x430   : > { %v2076_v17 = vadd.f32 %v2075_v12, %v2063_v3 }
 0x431   : > { %2381 = vst [vmem:[%s2811_s19 + $0x90] sm:$0xff] %v2377_v58 }
 0x432   : > { %v2082_v23 = vmax.f32 %v2076_v17, 0.0  ;;  %v2373_v38 = vpop.f32.mrf.mxu3 }
 0x434   : > { %2086 = vst.msk [vmem:[%s2811_s19 + $0x78] sm:$0xff] %vm4208_vm1, %v2082_v23  ;;  %v2360_v30 = vpop.f32.mrf.mxu2 }
 0x435   : > { %v2064_v51 = vpop.f32.mrf.mxu0 }
 0x436 PF: > { %s20_s13 = sadd.s32 1, %s2616_s13  }
 0x437   : > { %p17_p4 = scmp.ge.s32.totalorder %s20_s13, 4  }
 0x439   :  { %19 = sbr.rel (!%p17_p4) target bundleno = 1 (0x1), region = 90 }

</bundles_post_ra>
